<compile_context>
chip_gen: v5e
topology: v5e:2x2
jax: 0.10.0
libtpu: 0.0.40
codegen_flags: <defaults>
</compile_context>

<pallas_src>
import jax
import jax.numpy as jnp
from jax import lax
from jax.experimental import pallas as pl
from jax.experimental.pallas import tpu as pltpu


def lstm1_kernel(xf_ref, wih0_ref, whh0_ref, b0_ref, wih1_ref, whh1_ref,
                 b1_ref, fcw_ref, fcb_ref, out_ref):
    TB = xf_ref.shape[0]
    Bp = out_ref.shape[0]                 # padded batch (multiple of 8)
    T = TB // Bp
    H = whh0_ref.shape[0]
    G = 4 * H

    # ---- hoisted layer-0 input projection (one matmul, bias folded; off the
    # serial chain).  Kept as a value, no VMEM scratch round-trip. ----
    gx = (jnp.dot(xf_ref[...], wih0_ref[...],
                  preferred_element_type=jnp.float32)
          + b0_ref[...])                                   # (T*Bp, 4H) f32

    whh0 = whh0_ref[...]                                   # (H, 4H) bf16
    wih1 = wih1_ref[...]                                   # (H, 4H) bf16
    whh1 = whh1_ref[...]                                   # (H, 4H) bf16
    b1b = jnp.broadcast_to(b1_ref[...], (Bp, G))           # hoisted broadcast

    # ---- hoisted per-lane constants for the single-tanh gate activation:
    # sigmoid(x) = 0.5*tanh(0.5*x) + 0.5 on [i,f,o] lanes, tanh(x) on g lanes.
    lane = lax.broadcasted_iota(jnp.int32, (Bp, G), 1)
    g_lane = (lane >= 2 * H) & (lane < 3 * H)
    pre = jnp.where(g_lane, 1.0, 0.5).astype(jnp.float32)   # pre-scale
    aff_a = pre                                             # post-scale
    aff_b = jnp.where(g_lane, 0.0, 0.5).astype(jnp.float32) # post-offset

    def activate(gates):
        # one whole-vreg tanh -> lanes become [sig(i), sig(f), tanh(g), sig(o)]
        t = jnp.tanh(gates * pre)
        return aff_a * t + aff_b

    def update(act, c):
        i_g = act[:, 0 * H:1 * H]
        f_g = act[:, 1 * H:2 * H]
        g_g = act[:, 2 * H:3 * H]
        o_g = act[:, 3 * H:4 * H]
        c_new = f_g * c + i_g * g_g
        h_new = o_g * jnp.tanh(c_new)
        return h_new, c_new

    z = jnp.zeros((Bp, H), jnp.float32)
    h0, c0, h1, c1 = z, z, z, z

    # Fully unrolled T-step recurrence (static slices, static trip count).
    for t in range(T):
        # Off-chain: layer-1 recurrent contribution from the previous h1
        # (issued before layer 0's dependent work of this step).
        g1_rec = (jnp.dot(h1.astype(jnp.bfloat16), whh1,
                          preferred_element_type=jnp.float32)
                  + b1b)
        # Layer 0: input projection already hoisted; only h0 @ W_hh0 on chain.
        g0 = (gx[t * Bp:(t + 1) * Bp, :]
              + jnp.dot(h0.astype(jnp.bfloat16), whh0,
                        preferred_element_type=jnp.float32))
        h0, c0 = update(activate(g0), c0)
        # Layer 1: only the h0-dependent matmul stays on the critical path.
        g1 = (jnp.dot(h0.astype(jnp.bfloat16), wih1,
                      preferred_element_type=jnp.float32)
              + g1_rec)
        h1, c1 = update(activate(g1), c1)

    # fc_test on relu(last hidden of layer 2): VPU multiply + lane reduction.
    out_relu = jnp.maximum(h1, 0.0)                        # (Bp, H)
    out_ref[...] = (jnp.sum(out_relu * fcw_ref[...], axis=-1, keepdims=True)
                    + fcb_ref[...])                        # (Bp, 1)


def lstm1_forward(x, params):
    B, T, I = x.shape
    Bp = ((B + 7) // 8) * 8               # pad batch to full sublane tiles

    # Layout plumbing only: time-major flatten + zero-pad batch rows so the
    # hoisted input projection is one (T*Bp, I) matmul and every in-kernel
    # tensor is (8,128)-aligned.
    x_tm = jnp.transpose(x, (1, 0, 2))                       # (T, B, I)
    x_tm = jnp.pad(x_tm, ((0, 0), (0, Bp - B), (0, 0)))      # (T, Bp, I)
    x_flat = x_tm.reshape(T * Bp, I)

    # bf16 copies of the recurrent weights (cast once, outside the kernel).
    whh0_bf = params["whh0"].astype(jnp.bfloat16)
    wih1_bf = params["wih1"].astype(jnp.bfloat16)
    whh1_bf = params["whh1"].astype(jnp.bfloat16)

    vmem = pl.BlockSpec(memory_space=pltpu.MemorySpace.VMEM)
    out = pl.pallas_call(
        lstm1_kernel,
        out_shape=jax.ShapeDtypeStruct((Bp, 1), jnp.float32),
        in_specs=[vmem] * 9,
        out_specs=vmem,
    )(x_flat, params["wih0"], whh0_bf, params["b0"],
      wih1_bf, whh1_bf, params["b1"], params["fcw"], params["fcb"])
    return out[:B]


def init_params(key, input_size, hidden_size):
    """Deterministic init mirroring PyTorch shapes: U(-1/sqrt(H), 1/sqrt(H))."""
    H, I = hidden_size, input_size
    k = 1.0 / jnp.sqrt(jnp.float32(H))
    keys = jax.random.split(key, 10)

    def u(kk, shape):
        return jax.random.uniform(kk, shape, jnp.float32, -k, k)

    # layer 0: W_ih (4H, I), W_hh (4H, H), b_ih (4H), b_hh (4H)
    wih0 = u(keys[0], (4 * H, I))
    whh0 = u(keys[1], (4 * H, H))
    b0 = u(keys[2], (4 * H,)) + u(keys[3], (4 * H,))
    # layer 1: W_ih (4H, H) (applied to h0), W_hh (4H, H) (applied to h1)
    wih1 = u(keys[4], (4 * H, H))
    whh1 = u(keys[5], (4 * H, H))
    b1 = u(keys[6], (4 * H,)) + u(keys[7], (4 * H,))
    # fc_test: Linear(H, 1)
    kf = 1.0 / jnp.sqrt(jnp.float32(H))
    fcw = jax.random.uniform(keys[8], (1, H), jnp.float32, -kf, kf)
    fcb = jax.random.uniform(keys[9], (1,), jnp.float32, -kf, kf)

    return {
        "wih0": wih0.T,                 # (I, 4H)
        "whh0": whh0.T,                 # (H, 4H)
        "wih1": wih1.T,                 # (H, 4H)
        "whh1": whh1.T,                 # (H, 4H)
        "b0": b0.reshape(1, 4 * H),
        "b1": b1.reshape(1, 4 * H),
        "fcw": fcw,                     # (1, H) broadcast row
        "fcb": fcb.reshape(1, 1),
    }


def lstm1_reference(x, params):
    """Pure-JAX f32 reference of the same eval-mode forward."""
    B, T, I = x.shape
    H = params["whh0"].shape[0]

    def cell(g, c):
        i_g = jax.nn.sigmoid(g[:, :H])
        f_g = jax.nn.sigmoid(g[:, H:2 * H])
        g_g = jnp.tanh(g[:, 2 * H:3 * H])
        o_g = jax.nn.sigmoid(g[:, 3 * H:])
        c = f_g * c + i_g * g_g
        return o_g * jnp.tanh(c), c

    h0 = c0 = h1 = c1 = jnp.zeros((B, H), jnp.float32)
    for t in range(T):
        g0 = x[:, t, :] @ params["wih0"] + h0 @ params["whh0"] + params["b0"]
        h0, c0 = cell(g0, c0)
        g1 = h0 @ params["wih1"] + h1 @ params["whh1"] + params["b1"]
        h1, c1 = cell(g1, c1)
    return jnp.maximum(h1, 0.0) @ params["fcw"].T + params["fcb"]


if __name__ == "__main__":
    # Small shapes consistent with the module: 5 input features (input_columns),
    # 2-layer LSTM; batch=2, seq=8, hidden=32 so 4H = 128 (one full lane vreg).
    B, T, I, H = 2, 8, 5, 32

    key = jax.random.PRNGKey(0)
    k_x, k_p = jax.random.split(key)
    x = jax.random.normal(k_x, (B, T, I), jnp.float32)
    params = init_params(k_p, I, H)

    out = jax.block_until_ready(lstm1_forward(x, params))
    ref = jax.block_until_ready(lstm1_reference(x, params))

    assert out.shape == (B, 1), out.shape
    # bf16 MXU operands on the 8-step recurrence -> relaxed tolerance vs f32 ref.
    assert jnp.allclose(out, ref, atol=5e-2, rtol=5e-2), (out, ref)
    print("KERNEL_OK")
</pallas_src>

<mosaic_0001>
module attributes {stable_mosaic.version = 11 : i64} {
  func.func @lstm1_kernel(%arg0: memref<64x5xf32, #tpu.memory_space<vmem>>, %arg1: memref<5x128xf32, #tpu.memory_space<vmem>>, %arg2: memref<32x128xbf16, #tpu.memory_space<vmem>>, %arg3: memref<1x128xf32, #tpu.memory_space<vmem>>, %arg4: memref<32x128xbf16, #tpu.memory_space<vmem>>, %arg5: memref<32x128xbf16, #tpu.memory_space<vmem>>, %arg6: memref<1x128xf32, #tpu.memory_space<vmem>>, %arg7: memref<1x32xf32, #tpu.memory_space<vmem>>, %arg8: memref<1x1xf32, #tpu.memory_space<vmem>>, %arg9: memref<8x1xf32, #tpu.memory_space<vmem>>) attributes {dimension_semantics = [], scalar_prefetch = 0 : i64, scratch_operands = 0 : i64, tpu.core_type = #tpu.core_type<tc>} {
    %c0 = arith.constant 0 : index
    %c0_0 = arith.constant 0 : index
    %0 = vector.load %arg0[%c0, %c0_0] : memref<64x5xf32, #tpu.memory_space<vmem>>, vector<64x5xf32>
    %c0_1 = arith.constant 0 : index
    %c0_2 = arith.constant 0 : index
    %1 = vector.load %arg1[%c0_1, %c0_2] : memref<5x128xf32, #tpu.memory_space<vmem>>, vector<5x128xf32>
    %cst = arith.constant dense<0.000000e+00> : vector<64x128xf32>
    %2 = tpu.matmul %0, %1, %cst {dimension_numbers = #tpu.dot_dimension_numbers<[1], [0], [0], [1], [0, 0, 1, 1], [], []>} : vector<64x5xf32>, vector<5x128xf32>, vector<64x128xf32> -> vector<64x128xf32>
    %c0_3 = arith.constant 0 : index
    %c0_4 = arith.constant 0 : index
    %3 = vector.load %arg3[%c0_3, %c0_4] : memref<1x128xf32, #tpu.memory_space<vmem>>, vector<1x128xf32>
    %4 = vector.broadcast %3 : vector<1x128xf32> to vector<64x128xf32>
    %5 = arith.addf %2, %4 : vector<64x128xf32>
    %c0_5 = arith.constant 0 : index
    %c0_6 = arith.constant 0 : index
    %6 = vector.load %arg2[%c0_5, %c0_6] : memref<32x128xbf16, #tpu.memory_space<vmem>>, vector<32x128xbf16>
    %c0_7 = arith.constant 0 : index
    %c0_8 = arith.constant 0 : index
    %7 = vector.load %arg4[%c0_7, %c0_8] : memref<32x128xbf16, #tpu.memory_space<vmem>>, vector<32x128xbf16>
    %c0_9 = arith.constant 0 : index
    %c0_10 = arith.constant 0 : index
    %8 = vector.load %arg5[%c0_9, %c0_10] : memref<32x128xbf16, #tpu.memory_space<vmem>>, vector<32x128xbf16>
    %c0_11 = arith.constant 0 : index
    %c0_12 = arith.constant 0 : index
    %9 = vector.load %arg6[%c0_11, %c0_12] : memref<1x128xf32, #tpu.memory_space<vmem>>, vector<1x128xf32>
    %10 = vector.shape_cast %9 : vector<1x128xf32> to vector<1x128xf32>
    %11 = vector.broadcast %10 : vector<1x128xf32> to vector<8x128xf32>
    %12 = tpu.iota {dimensions = array<i32: 1>} : vector<8x128xi32>
    %c64_i32 = arith.constant 64 : i32
    %13 = vector.broadcast %c64_i32 : i32 to vector<8x128xi32>
    %14 = arith.cmpi sge, %12, %13 : vector<8x128xi32>
    %c96_i32 = arith.constant 96 : i32
    %15 = vector.broadcast %c96_i32 : i32 to vector<8x128xi32>
    %16 = arith.cmpi slt, %12, %15 : vector<8x128xi32>
    %17 = arith.andi %14, %16 : vector<8x128xi1>
    %cst_13 = arith.constant 1.000000e+00 : f32
    %cst_14 = arith.constant 5.000000e-01 : f32
    %18 = vector.broadcast %cst_13 : f32 to vector<8x128xf32>
    %19 = vector.broadcast %cst_14 : f32 to vector<8x128xf32>
    %20 = arith.select %17, %18, %19 : vector<8x128xi1>, vector<8x128xf32>
    %cst_15 = arith.constant 0.000000e+00 : f32
    %cst_16 = arith.constant 5.000000e-01 : f32
    %21 = vector.broadcast %cst_15 : f32 to vector<8x128xf32>
    %22 = vector.broadcast %cst_16 : f32 to vector<8x128xf32>
    %23 = arith.select %17, %21, %22 : vector<8x128xi1>, vector<8x128xf32>
    %cst_17 = arith.constant 0.000000e+00 : f32
    %24 = vector.broadcast %cst_17 : f32 to vector<8x32xf32>
    %25 = arith.truncf %24 : vector<8x32xf32> to vector<8x32xbf16>
    %cst_18 = arith.constant dense<0.000000e+00> : vector<8x128xf32>
    %26 = tpu.matmul %25, %8, %cst_18 {dimension_numbers = #tpu.dot_dimension_numbers<[1], [0], [0], [1], [0, 0, 1, 1], [], []>} : vector<8x32xbf16>, vector<32x128xbf16>, vector<8x128xf32> -> vector<8x128xf32>
    %27 = arith.addf %26, %11 : vector<8x128xf32>
    %28 = vector.extract_strided_slice %5 {offsets = [0, 0], sizes = [8, 128], strides = [1, 1]} : vector<64x128xf32> to vector<8x128xf32>
    %29 = arith.truncf %24 : vector<8x32xf32> to vector<8x32xbf16>
    %cst_19 = arith.constant dense<0.000000e+00> : vector<8x128xf32>
    %30 = tpu.matmul %29, %6, %cst_19 {dimension_numbers = #tpu.dot_dimension_numbers<[1], [0], [0], [1], [0, 0, 1, 1], [], []>} : vector<8x32xbf16>, vector<32x128xbf16>, vector<8x128xf32> -> vector<8x128xf32>
    %31 = arith.addf %28, %30 : vector<8x128xf32>
    %32 = arith.mulf %31, %20 : vector<8x128xf32>
    %33 = math.tanh %32 : vector<8x128xf32>
    %34 = arith.mulf %20, %33 : vector<8x128xf32>
    %35 = arith.addf %34, %23 : vector<8x128xf32>
    %36 = vector.extract_strided_slice %35 {offsets = [0, 0], sizes = [8, 32], strides = [1, 1]} : vector<8x128xf32> to vector<8x32xf32>
    %37 = vector.extract_strided_slice %35 {offsets = [0, 32], sizes = [8, 32], strides = [1, 1]} : vector<8x128xf32> to vector<8x32xf32>
    %38 = vector.extract_strided_slice %35 {offsets = [0, 64], sizes = [8, 32], strides = [1, 1]} : vector<8x128xf32> to vector<8x32xf32>
    %39 = vector.extract_strided_slice %35 {offsets = [0, 96], sizes = [8, 32], strides = [1, 1]} : vector<8x128xf32> to vector<8x32xf32>
    %40 = arith.mulf %37, %24 : vector<8x32xf32>
    %41 = arith.mulf %36, %38 : vector<8x32xf32>
    %42 = arith.addf %40, %41 : vector<8x32xf32>
    %43 = math.tanh %42 : vector<8x32xf32>
    %44 = arith.mulf %39, %43 : vector<8x32xf32>
    %45 = arith.truncf %44 : vector<8x32xf32> to vector<8x32xbf16>
    %cst_20 = arith.constant dense<0.000000e+00> : vector<8x128xf32>
    %46 = tpu.matmul %45, %7, %cst_20 {dimension_numbers = #tpu.dot_dimension_numbers<[1], [0], [0], [1], [0, 0, 1, 1], [], []>} : vector<8x32xbf16>, vector<32x128xbf16>, vector<8x128xf32> -> vector<8x128xf32>
    %47 = arith.addf %46, %27 : vector<8x128xf32>
    %48 = arith.mulf %47, %20 : vector<8x128xf32>
    %49 = math.tanh %48 : vector<8x128xf32>
    %50 = arith.mulf %20, %49 : vector<8x128xf32>
    %51 = arith.addf %50, %23 : vector<8x128xf32>
    %52 = vector.extract_strided_slice %51 {offsets = [0, 0], sizes = [8, 32], strides = [1, 1]} : vector<8x128xf32> to vector<8x32xf32>
    %53 = vector.extract_strided_slice %51 {offsets = [0, 32], sizes = [8, 32], strides = [1, 1]} : vector<8x128xf32> to vector<8x32xf32>
    %54 = vector.extract_strided_slice %51 {offsets = [0, 64], sizes = [8, 32], strides = [1, 1]} : vector<8x128xf32> to vector<8x32xf32>
    %55 = vector.extract_strided_slice %51 {offsets = [0, 96], sizes = [8, 32], strides = [1, 1]} : vector<8x128xf32> to vector<8x32xf32>
    %56 = arith.mulf %53, %24 : vector<8x32xf32>
    %57 = arith.mulf %52, %54 : vector<8x32xf32>
    %58 = arith.addf %56, %57 : vector<8x32xf32>
    %59 = math.tanh %58 : vector<8x32xf32>
    %60 = arith.mulf %55, %59 : vector<8x32xf32>
    %61 = arith.truncf %60 : vector<8x32xf32> to vector<8x32xbf16>
    %cst_21 = arith.constant dense<0.000000e+00> : vector<8x128xf32>
    %62 = tpu.matmul %61, %8, %cst_21 {dimension_numbers = #tpu.dot_dimension_numbers<[1], [0], [0], [1], [0, 0, 1, 1], [], []>} : vector<8x32xbf16>, vector<32x128xbf16>, vector<8x128xf32> -> vector<8x128xf32>
    %63 = arith.addf %62, %11 : vector<8x128xf32>
    %64 = vector.extract_strided_slice %5 {offsets = [8, 0], sizes = [8, 128], strides = [1, 1]} : vector<64x128xf32> to vector<8x128xf32>
    %65 = arith.truncf %44 : vector<8x32xf32> to vector<8x32xbf16>
    %cst_22 = arith.constant dense<0.000000e+00> : vector<8x128xf32>
    %66 = tpu.matmul %65, %6, %cst_22 {dimension_numbers = #tpu.dot_dimension_numbers<[1], [0], [0], [1], [0, 0, 1, 1], [], []>} : vector<8x32xbf16>, vector<32x128xbf16>, vector<8x128xf32> -> vector<8x128xf32>
    %67 = arith.addf %64, %66 : vector<8x128xf32>
    %68 = arith.mulf %67, %20 : vector<8x128xf32>
    %69 = math.tanh %68 : vector<8x128xf32>
    %70 = arith.mulf %20, %69 : vector<8x128xf32>
    %71 = arith.addf %70, %23 : vector<8x128xf32>
    %72 = vector.extract_strided_slice %71 {offsets = [0, 0], sizes = [8, 32], strides = [1, 1]} : vector<8x128xf32> to vector<8x32xf32>
    %73 = vector.extract_strided_slice %71 {offsets = [0, 32], sizes = [8, 32], strides = [1, 1]} : vector<8x128xf32> to vector<8x32xf32>
    %74 = vector.extract_strided_slice %71 {offsets = [0, 64], sizes = [8, 32], strides = [1, 1]} : vector<8x128xf32> to vector<8x32xf32>
    %75 = vector.extract_strided_slice %71 {offsets = [0, 96], sizes = [8, 32], strides = [1, 1]} : vector<8x128xf32> to vector<8x32xf32>
    %76 = arith.mulf %73, %42 : vector<8x32xf32>
    %77 = arith.mulf %72, %74 : vector<8x32xf32>
    %78 = arith.addf %76, %77 : vector<8x32xf32>
    %79 = math.tanh %78 : vector<8x32xf32>
    %80 = arith.mulf %75, %79 : vector<8x32xf32>
    %81 = arith.truncf %80 : vector<8x32xf32> to vector<8x32xbf16>
    %cst_23 = arith.constant dense<0.000000e+00> : vector<8x128xf32>
    %82 = tpu.matmul %81, %7, %cst_23 {dimension_numbers = #tpu.dot_dimension_numbers<[1], [0], [0], [1], [0, 0, 1, 1], [], []>} : vector<8x32xbf16>, vector<32x128xbf16>, vector<8x128xf32> -> vector<8x128xf32>
    %83 = arith.addf %82, %63 : vector<8x128xf32>
    %84 = arith.mulf %83, %20 : vector<8x128xf32>
    %85 = math.tanh %84 : vector<8x128xf32>
    %86 = arith.mulf %20, %85 : vector<8x128xf32>
    %87 = arith.addf %86, %23 : vector<8x128xf32>
    %88 = vector.extract_strided_slice %87 {offsets = [0, 0], sizes = [8, 32], strides = [1, 1]} : vector<8x128xf32> to vector<8x32xf32>
    %89 = vector.extract_strided_slice %87 {offsets = [0, 32], sizes = [8, 32], strides = [1, 1]} : vector<8x128xf32> to vector<8x32xf32>
    %90 = vector.extract_strided_slice %87 {offsets = [0, 64], sizes = [8, 32], strides = [1, 1]} : vector<8x128xf32> to vector<8x32xf32>
    %91 = vector.extract_strided_slice %87 {offsets = [0, 96], sizes = [8, 32], strides = [1, 1]} : vector<8x128xf32> to vector<8x32xf32>
    %92 = arith.mulf %89, %58 : vector<8x32xf32>
    %93 = arith.mulf %88, %90 : vector<8x32xf32>
    %94 = arith.addf %92, %93 : vector<8x32xf32>
    %95 = math.tanh %94 : vector<8x32xf32>
    %96 = arith.mulf %91, %95 : vector<8x32xf32>
    %97 = arith.truncf %96 : vector<8x32xf32> to vector<8x32xbf16>
    %cst_24 = arith.constant dense<0.000000e+00> : vector<8x128xf32>
    %98 = tpu.matmul %97, %8, %cst_24 {dimension_numbers = #tpu.dot_dimension_numbers<[1], [0], [0], [1], [0, 0, 1, 1], [], []>} : vector<8x32xbf16>, vector<32x128xbf16>, vector<8x128xf32> -> vector<8x128xf32>
    %99 = arith.addf %98, %11 : vector<8x128xf32>
    %100 = vector.extract_strided_slice %5 {offsets = [16, 0], sizes = [8, 128], strides = [1, 1]} : vector<64x128xf32> to vector<8x128xf32>
    %101 = arith.truncf %80 : vector<8x32xf32> to vector<8x32xbf16>
    %cst_25 = arith.constant dense<0.000000e+00> : vector<8x128xf32>
    %102 = tpu.matmul %101, %6, %cst_25 {dimension_numbers = #tpu.dot_dimension_numbers<[1], [0], [0], [1], [0, 0, 1, 1], [], []>} : vector<8x32xbf16>, vector<32x128xbf16>, vector<8x128xf32> -> vector<8x128xf32>
    %103 = arith.addf %100, %102 : vector<8x128xf32>
    %104 = arith.mulf %103, %20 : vector<8x128xf32>
    %105 = math.tanh %104 : vector<8x128xf32>
    %106 = arith.mulf %20, %105 : vector<8x128xf32>
    %107 = arith.addf %106, %23 : vector<8x128xf32>
    %108 = vector.extract_strided_slice %107 {offsets = [0, 0], sizes = [8, 32], strides = [1, 1]} : vector<8x128xf32> to vector<8x32xf32>
    %109 = vector.extract_strided_slice %107 {offsets = [0, 32], sizes = [8, 32], strides = [1, 1]} : vector<8x128xf32> to vector<8x32xf32>
    %110 = vector.extract_strided_slice %107 {offsets = [0, 64], sizes = [8, 32], strides = [1, 1]} : vector<8x128xf32> to vector<8x32xf32>
    %111 = vector.extract_strided_slice %107 {offsets = [0, 96], sizes = [8, 32], strides = [1, 1]} : vector<8x128xf32> to vector<8x32xf32>
    %112 = arith.mulf %109, %78 : vector<8x32xf32>
    %113 = arith.mulf %108, %110 : vector<8x32xf32>
    %114 = arith.addf %112, %113 : vector<8x32xf32>
    %115 = math.tanh %114 : vector<8x32xf32>
    %116 = arith.mulf %111, %115 : vector<8x32xf32>
    %117 = arith.truncf %116 : vector<8x32xf32> to vector<8x32xbf16>
    %cst_26 = arith.constant dense<0.000000e+00> : vector<8x128xf32>
    %118 = tpu.matmul %117, %7, %cst_26 {dimension_numbers = #tpu.dot_dimension_numbers<[1], [0], [0], [1], [0, 0, 1, 1], [], []>} : vector<8x32xbf16>, vector<32x128xbf16>, vector<8x128xf32> -> vector<8x128xf32>
    %119 = arith.addf %118, %99 : vector<8x128xf32>
    %120 = arith.mulf %119, %20 : vector<8x128xf32>
    %121 = math.tanh %120 : vector<8x128xf32>
    %122 = arith.mulf %20, %121 : vector<8x128xf32>
    %123 = arith.addf %122, %23 : vector<8x128xf32>
    %124 = vector.extract_strided_slice %123 {offsets = [0, 0], sizes = [8, 32], strides = [1, 1]} : vector<8x128xf32> to vector<8x32xf32>
    %125 = vector.extract_strided_slice %123 {offsets = [0, 32], sizes = [8, 32], strides = [1, 1]} : vector<8x128xf32> to vector<8x32xf32>
    %126 = vector.extract_strided_slice %123 {offsets = [0, 64], sizes = [8, 32], strides = [1, 1]} : vector<8x128xf32> to vector<8x32xf32>
    %127 = vector.extract_strided_slice %123 {offsets = [0, 96], sizes = [8, 32], strides = [1, 1]} : vector<8x128xf32> to vector<8x32xf32>
    %128 = arith.mulf %125, %94 : vector<8x32xf32>
    %129 = arith.mulf %124, %126 : vector<8x32xf32>
    %130 = arith.addf %128, %129 : vector<8x32xf32>
    %131 = math.tanh %130 : vector<8x32xf32>
    %132 = arith.mulf %127, %131 : vector<8x32xf32>
    %133 = arith.truncf %132 : vector<8x32xf32> to vector<8x32xbf16>
    %cst_27 = arith.constant dense<0.000000e+00> : vector<8x128xf32>
    %134 = tpu.matmul %133, %8, %cst_27 {dimension_numbers = #tpu.dot_dimension_numbers<[1], [0], [0], [1], [0, 0, 1, 1], [], []>} : vector<8x32xbf16>, vector<32x128xbf16>, vector<8x128xf32> -> vector<8x128xf32>
    %135 = arith.addf %134, %11 : vector<8x128xf32>
    %136 = vector.extract_strided_slice %5 {offsets = [24, 0], sizes = [8, 128], strides = [1, 1]} : vector<64x128xf32> to vector<8x128xf32>
    %137 = arith.truncf %116 : vector<8x32xf32> to vector<8x32xbf16>
    %cst_28 = arith.constant dense<0.000000e+00> : vector<8x128xf32>
    %138 = tpu.matmul %137, %6, %cst_28 {dimension_numbers = #tpu.dot_dimension_numbers<[1], [0], [0], [1], [0, 0, 1, 1], [], []>} : vector<8x32xbf16>, vector<32x128xbf16>, vector<8x128xf32> -> vector<8x128xf32>
    %139 = arith.addf %136, %138 : vector<8x128xf32>
    %140 = arith.mulf %139, %20 : vector<8x128xf32>
    %141 = math.tanh %140 : vector<8x128xf32>
    %142 = arith.mulf %20, %141 : vector<8x128xf32>
    %143 = arith.addf %142, %23 : vector<8x128xf32>
    %144 = vector.extract_strided_slice %143 {offsets = [0, 0], sizes = [8, 32], strides = [1, 1]} : vector<8x128xf32> to vector<8x32xf32>
    %145 = vector.extract_strided_slice %143 {offsets = [0, 32], sizes = [8, 32], strides = [1, 1]} : vector<8x128xf32> to vector<8x32xf32>
    %146 = vector.extract_strided_slice %143 {offsets = [0, 64], sizes = [8, 32], strides = [1, 1]} : vector<8x128xf32> to vector<8x32xf32>
    %147 = vector.extract_strided_slice %143 {offsets = [0, 96], sizes = [8, 32], strides = [1, 1]} : vector<8x128xf32> to vector<8x32xf32>
    %148 = arith.mulf %145, %114 : vector<8x32xf32>
    %149 = arith.mulf %144, %146 : vector<8x32xf32>
    %150 = arith.addf %148, %149 : vector<8x32xf32>
    %151 = math.tanh %150 : vector<8x32xf32>
    %152 = arith.mulf %147, %151 : vector<8x32xf32>
    %153 = arith.truncf %152 : vector<8x32xf32> to vector<8x32xbf16>
    %cst_29 = arith.constant dense<0.000000e+00> : vector<8x128xf32>
    %154 = tpu.matmul %153, %7, %cst_29 {dimension_numbers = #tpu.dot_dimension_numbers<[1], [0], [0], [1], [0, 0, 1, 1], [], []>} : vector<8x32xbf16>, vector<32x128xbf16>, vector<8x128xf32> -> vector<8x128xf32>
    %155 = arith.addf %154, %135 : vector<8x128xf32>
    %156 = arith.mulf %155, %20 : vector<8x128xf32>
    %157 = math.tanh %156 : vector<8x128xf32>
    %158 = arith.mulf %20, %157 : vector<8x128xf32>
    %159 = arith.addf %158, %23 : vector<8x128xf32>
    %160 = vector.extract_strided_slice %159 {offsets = [0, 0], sizes = [8, 32], strides = [1, 1]} : vector<8x128xf32> to vector<8x32xf32>
    %161 = vector.extract_strided_slice %159 {offsets = [0, 32], sizes = [8, 32], strides = [1, 1]} : vector<8x128xf32> to vector<8x32xf32>
    %162 = vector.extract_strided_slice %159 {offsets = [0, 64], sizes = [8, 32], strides = [1, 1]} : vector<8x128xf32> to vector<8x32xf32>
    %163 = vector.extract_strided_slice %159 {offsets = [0, 96], sizes = [8, 32], strides = [1, 1]} : vector<8x128xf32> to vector<8x32xf32>
    %164 = arith.mulf %161, %130 : vector<8x32xf32>
    %165 = arith.mulf %160, %162 : vector<8x32xf32>
    %166 = arith.addf %164, %165 : vector<8x32xf32>
    %167 = math.tanh %166 : vector<8x32xf32>
    %168 = arith.mulf %163, %167 : vector<8x32xf32>
    %169 = arith.truncf %168 : vector<8x32xf32> to vector<8x32xbf16>
    %cst_30 = arith.constant dense<0.000000e+00> : vector<8x128xf32>
    %170 = tpu.matmul %169, %8, %cst_30 {dimension_numbers = #tpu.dot_dimension_numbers<[1], [0], [0], [1], [0, 0, 1, 1], [], []>} : vector<8x32xbf16>, vector<32x128xbf16>, vector<8x128xf32> -> vector<8x128xf32>
    %171 = arith.addf %170, %11 : vector<8x128xf32>
    %172 = vector.extract_strided_slice %5 {offsets = [32, 0], sizes = [8, 128], strides = [1, 1]} : vector<64x128xf32> to vector<8x128xf32>
    %173 = arith.truncf %152 : vector<8x32xf32> to vector<8x32xbf16>
    %cst_31 = arith.constant dense<0.000000e+00> : vector<8x128xf32>
    %174 = tpu.matmul %173, %6, %cst_31 {dimension_numbers = #tpu.dot_dimension_numbers<[1], [0], [0], [1], [0, 0, 1, 1], [], []>} : vector<8x32xbf16>, vector<32x128xbf16>, vector<8x128xf32> -> vector<8x128xf32>
    %175 = arith.addf %172, %174 : vector<8x128xf32>
    %176 = arith.mulf %175, %20 : vector<8x128xf32>
    %177 = math.tanh %176 : vector<8x128xf32>
    %178 = arith.mulf %20, %177 : vector<8x128xf32>
    %179 = arith.addf %178, %23 : vector<8x128xf32>
    %180 = vector.extract_strided_slice %179 {offsets = [0, 0], sizes = [8, 32], strides = [1, 1]} : vector<8x128xf32> to vector<8x32xf32>
    %181 = vector.extract_strided_slice %179 {offsets = [0, 32], sizes = [8, 32], strides = [1, 1]} : vector<8x128xf32> to vector<8x32xf32>
    %182 = vector.extract_strided_slice %179 {offsets = [0, 64], sizes = [8, 32], strides = [1, 1]} : vector<8x128xf32> to vector<8x32xf32>
    %183 = vector.extract_strided_slice %179 {offsets = [0, 96], sizes = [8, 32], strides = [1, 1]} : vector<8x128xf32> to vector<8x32xf32>
    %184 = arith.mulf %181, %150 : vector<8x32xf32>
    %185 = arith.mulf %180, %182 : vector<8x32xf32>
    %186 = arith.addf %184, %185 : vector<8x32xf32>
    %187 = math.tanh %186 : vector<8x32xf32>
    %188 = arith.mulf %183, %187 : vector<8x32xf32>
    %189 = arith.truncf %188 : vector<8x32xf32> to vector<8x32xbf16>
    %cst_32 = arith.constant dense<0.000000e+00> : vector<8x128xf32>
    %190 = tpu.matmul %189, %7, %cst_32 {dimension_numbers = #tpu.dot_dimension_numbers<[1], [0], [0], [1], [0, 0, 1, 1], [], []>} : vector<8x32xbf16>, vector<32x128xbf16>, vector<8x128xf32> -> vector<8x128xf32>
    %191 = arith.addf %190, %171 : vector<8x128xf32>
    %192 = arith.mulf %191, %20 : vector<8x128xf32>
    %193 = math.tanh %192 : vector<8x128xf32>
    %194 = arith.mulf %20, %193 : vector<8x128xf32>
    %195 = arith.addf %194, %23 : vector<8x128xf32>
    %196 = vector.extract_strided_slice %195 {offsets = [0, 0], sizes = [8, 32], strides = [1, 1]} : vector<8x128xf32> to vector<8x32xf32>
    %197 = vector.extract_strided_slice %195 {offsets = [0, 32], sizes = [8, 32], strides = [1, 1]} : vector<8x128xf32> to vector<8x32xf32>
    %198 = vector.extract_strided_slice %195 {offsets = [0, 64], sizes = [8, 32], strides = [1, 1]} : vector<8x128xf32> to vector<8x32xf32>
    %199 = vector.extract_strided_slice %195 {offsets = [0, 96], sizes = [8, 32], strides = [1, 1]} : vector<8x128xf32> to vector<8x32xf32>
    %200 = arith.mulf %197, %166 : vector<8x32xf32>
    %201 = arith.mulf %196, %198 : vector<8x32xf32>
    %202 = arith.addf %200, %201 : vector<8x32xf32>
    %203 = math.tanh %202 : vector<8x32xf32>
    %204 = arith.mulf %199, %203 : vector<8x32xf32>
    %205 = arith.truncf %204 : vector<8x32xf32> to vector<8x32xbf16>
    %cst_33 = arith.constant dense<0.000000e+00> : vector<8x128xf32>
    %206 = tpu.matmul %205, %8, %cst_33 {dimension_numbers = #tpu.dot_dimension_numbers<[1], [0], [0], [1], [0, 0, 1, 1], [], []>} : vector<8x32xbf16>, vector<32x128xbf16>, vector<8x128xf32> -> vector<8x128xf32>
    %207 = arith.addf %206, %11 : vector<8x128xf32>
    %208 = vector.extract_strided_slice %5 {offsets = [40, 0], sizes = [8, 128], strides = [1, 1]} : vector<64x128xf32> to vector<8x128xf32>
    %209 = arith.truncf %188 : vector<8x32xf32> to vector<8x32xbf16>
    %cst_34 = arith.constant dense<0.000000e+00> : vector<8x128xf32>
    %210 = tpu.matmul %209, %6, %cst_34 {dimension_numbers = #tpu.dot_dimension_numbers<[1], [0], [0], [1], [0, 0, 1, 1], [], []>} : vector<8x32xbf16>, vector<32x128xbf16>, vector<8x128xf32> -> vector<8x128xf32>
    %211 = arith.addf %208, %210 : vector<8x128xf32>
    %212 = arith.mulf %211, %20 : vector<8x128xf32>
    %213 = math.tanh %212 : vector<8x128xf32>
    %214 = arith.mulf %20, %213 : vector<8x128xf32>
    %215 = arith.addf %214, %23 : vector<8x128xf32>
    %216 = vector.extract_strided_slice %215 {offsets = [0, 0], sizes = [8, 32], strides = [1, 1]} : vector<8x128xf32> to vector<8x32xf32>
    %217 = vector.extract_strided_slice %215 {offsets = [0, 32], sizes = [8, 32], strides = [1, 1]} : vector<8x128xf32> to vector<8x32xf32>
    %218 = vector.extract_strided_slice %215 {offsets = [0, 64], sizes = [8, 32], strides = [1, 1]} : vector<8x128xf32> to vector<8x32xf32>
    %219 = vector.extract_strided_slice %215 {offsets = [0, 96], sizes = [8, 32], strides = [1, 1]} : vector<8x128xf32> to vector<8x32xf32>
    %220 = arith.mulf %217, %186 : vector<8x32xf32>
    %221 = arith.mulf %216, %218 : vector<8x32xf32>
    %222 = arith.addf %220, %221 : vector<8x32xf32>
    %223 = math.tanh %222 : vector<8x32xf32>
    %224 = arith.mulf %219, %223 : vector<8x32xf32>
    %225 = arith.truncf %224 : vector<8x32xf32> to vector<8x32xbf16>
    %cst_35 = arith.constant dense<0.000000e+00> : vector<8x128xf32>
    %226 = tpu.matmul %225, %7, %cst_35 {dimension_numbers = #tpu.dot_dimension_numbers<[1], [0], [0], [1], [0, 0, 1, 1], [], []>} : vector<8x32xbf16>, vector<32x128xbf16>, vector<8x128xf32> -> vector<8x128xf32>
    %227 = arith.addf %226, %207 : vector<8x128xf32>
    %228 = arith.mulf %227, %20 : vector<8x128xf32>
    %229 = math.tanh %228 : vector<8x128xf32>
    %230 = arith.mulf %20, %229 : vector<8x128xf32>
    %231 = arith.addf %230, %23 : vector<8x128xf32>
    %232 = vector.extract_strided_slice %231 {offsets = [0, 0], sizes = [8, 32], strides = [1, 1]} : vector<8x128xf32> to vector<8x32xf32>
    %233 = vector.extract_strided_slice %231 {offsets = [0, 32], sizes = [8, 32], strides = [1, 1]} : vector<8x128xf32> to vector<8x32xf32>
    %234 = vector.extract_strided_slice %231 {offsets = [0, 64], sizes = [8, 32], strides = [1, 1]} : vector<8x128xf32> to vector<8x32xf32>
    %235 = vector.extract_strided_slice %231 {offsets = [0, 96], sizes = [8, 32], strides = [1, 1]} : vector<8x128xf32> to vector<8x32xf32>
    %236 = arith.mulf %233, %202 : vector<8x32xf32>
    %237 = arith.mulf %232, %234 : vector<8x32xf32>
    %238 = arith.addf %236, %237 : vector<8x32xf32>
    %239 = math.tanh %238 : vector<8x32xf32>
    %240 = arith.mulf %235, %239 : vector<8x32xf32>
    %241 = arith.truncf %240 : vector<8x32xf32> to vector<8x32xbf16>
    %cst_36 = arith.constant dense<0.000000e+00> : vector<8x128xf32>
    %242 = tpu.matmul %241, %8, %cst_36 {dimension_numbers = #tpu.dot_dimension_numbers<[1], [0], [0], [1], [0, 0, 1, 1], [], []>} : vector<8x32xbf16>, vector<32x128xbf16>, vector<8x128xf32> -> vector<8x128xf32>
    %243 = arith.addf %242, %11 : vector<8x128xf32>
    %244 = vector.extract_strided_slice %5 {offsets = [48, 0], sizes = [8, 128], strides = [1, 1]} : vector<64x128xf32> to vector<8x128xf32>
    %245 = arith.truncf %224 : vector<8x32xf32> to vector<8x32xbf16>
    %cst_37 = arith.constant dense<0.000000e+00> : vector<8x128xf32>
    %246 = tpu.matmul %245, %6, %cst_37 {dimension_numbers = #tpu.dot_dimension_numbers<[1], [0], [0], [1], [0, 0, 1, 1], [], []>} : vector<8x32xbf16>, vector<32x128xbf16>, vector<8x128xf32> -> vector<8x128xf32>
    %247 = arith.addf %244, %246 : vector<8x128xf32>
    %248 = arith.mulf %247, %20 : vector<8x128xf32>
    %249 = math.tanh %248 : vector<8x128xf32>
    %250 = arith.mulf %20, %249 : vector<8x128xf32>
    %251 = arith.addf %250, %23 : vector<8x128xf32>
    %252 = vector.extract_strided_slice %251 {offsets = [0, 0], sizes = [8, 32], strides = [1, 1]} : vector<8x128xf32> to vector<8x32xf32>
    %253 = vector.extract_strided_slice %251 {offsets = [0, 32], sizes = [8, 32], strides = [1, 1]} : vector<8x128xf32> to vector<8x32xf32>
    %254 = vector.extract_strided_slice %251 {offsets = [0, 64], sizes = [8, 32], strides = [1, 1]} : vector<8x128xf32> to vector<8x32xf32>
    %255 = vector.extract_strided_slice %251 {offsets = [0, 96], sizes = [8, 32], strides = [1, 1]} : vector<8x128xf32> to vector<8x32xf32>
    %256 = arith.mulf %253, %222 : vector<8x32xf32>
    %257 = arith.mulf %252, %254 : vector<8x32xf32>
    %258 = arith.addf %256, %257 : vector<8x32xf32>
    %259 = math.tanh %258 : vector<8x32xf32>
    %260 = arith.mulf %255, %259 : vector<8x32xf32>
    %261 = arith.truncf %260 : vector<8x32xf32> to vector<8x32xbf16>
    %cst_38 = arith.constant dense<0.000000e+00> : vector<8x128xf32>
    %262 = tpu.matmul %261, %7, %cst_38 {dimension_numbers = #tpu.dot_dimension_numbers<[1], [0], [0], [1], [0, 0, 1, 1], [], []>} : vector<8x32xbf16>, vector<32x128xbf16>, vector<8x128xf32> -> vector<8x128xf32>
    %263 = arith.addf %262, %243 : vector<8x128xf32>
    %264 = arith.mulf %263, %20 : vector<8x128xf32>
    %265 = math.tanh %264 : vector<8x128xf32>
    %266 = arith.mulf %20, %265 : vector<8x128xf32>
    %267 = arith.addf %266, %23 : vector<8x128xf32>
    %268 = vector.extract_strided_slice %267 {offsets = [0, 0], sizes = [8, 32], strides = [1, 1]} : vector<8x128xf32> to vector<8x32xf32>
    %269 = vector.extract_strided_slice %267 {offsets = [0, 32], sizes = [8, 32], strides = [1, 1]} : vector<8x128xf32> to vector<8x32xf32>
    %270 = vector.extract_strided_slice %267 {offsets = [0, 64], sizes = [8, 32], strides = [1, 1]} : vector<8x128xf32> to vector<8x32xf32>
    %271 = vector.extract_strided_slice %267 {offsets = [0, 96], sizes = [8, 32], strides = [1, 1]} : vector<8x128xf32> to vector<8x32xf32>
    %272 = arith.mulf %269, %238 : vector<8x32xf32>
    %273 = arith.mulf %268, %270 : vector<8x32xf32>
    %274 = arith.addf %272, %273 : vector<8x32xf32>
    %275 = math.tanh %274 : vector<8x32xf32>
    %276 = arith.mulf %271, %275 : vector<8x32xf32>
    %277 = arith.truncf %276 : vector<8x32xf32> to vector<8x32xbf16>
    %cst_39 = arith.constant dense<0.000000e+00> : vector<8x128xf32>
    %278 = tpu.matmul %277, %8, %cst_39 {dimension_numbers = #tpu.dot_dimension_numbers<[1], [0], [0], [1], [0, 0, 1, 1], [], []>} : vector<8x32xbf16>, vector<32x128xbf16>, vector<8x128xf32> -> vector<8x128xf32>
    %279 = arith.addf %278, %11 : vector<8x128xf32>
    %280 = vector.extract_strided_slice %5 {offsets = [56, 0], sizes = [8, 128], strides = [1, 1]} : vector<64x128xf32> to vector<8x128xf32>
    %281 = arith.truncf %260 : vector<8x32xf32> to vector<8x32xbf16>
    %cst_40 = arith.constant dense<0.000000e+00> : vector<8x128xf32>
    %282 = tpu.matmul %281, %6, %cst_40 {dimension_numbers = #tpu.dot_dimension_numbers<[1], [0], [0], [1], [0, 0, 1, 1], [], []>} : vector<8x32xbf16>, vector<32x128xbf16>, vector<8x128xf32> -> vector<8x128xf32>
    %283 = arith.addf %280, %282 : vector<8x128xf32>
    %284 = arith.mulf %283, %20 : vector<8x128xf32>
    %285 = math.tanh %284 : vector<8x128xf32>
    %286 = arith.mulf %20, %285 : vector<8x128xf32>
    %287 = arith.addf %286, %23 : vector<8x128xf32>
    %288 = vector.extract_strided_slice %287 {offsets = [0, 0], sizes = [8, 32], strides = [1, 1]} : vector<8x128xf32> to vector<8x32xf32>
    %289 = vector.extract_strided_slice %287 {offsets = [0, 32], sizes = [8, 32], strides = [1, 1]} : vector<8x128xf32> to vector<8x32xf32>
    %290 = vector.extract_strided_slice %287 {offsets = [0, 64], sizes = [8, 32], strides = [1, 1]} : vector<8x128xf32> to vector<8x32xf32>
    %291 = vector.extract_strided_slice %287 {offsets = [0, 96], sizes = [8, 32], strides = [1, 1]} : vector<8x128xf32> to vector<8x32xf32>
    %292 = arith.mulf %289, %258 : vector<8x32xf32>
    %293 = arith.mulf %288, %290 : vector<8x32xf32>
    %294 = arith.addf %292, %293 : vector<8x32xf32>
    %295 = math.tanh %294 : vector<8x32xf32>
    %296 = arith.mulf %291, %295 : vector<8x32xf32>
    %297 = arith.truncf %296 : vector<8x32xf32> to vector<8x32xbf16>
    %cst_41 = arith.constant dense<0.000000e+00> : vector<8x128xf32>
    %298 = tpu.matmul %297, %7, %cst_41 {dimension_numbers = #tpu.dot_dimension_numbers<[1], [0], [0], [1], [0, 0, 1, 1], [], []>} : vector<8x32xbf16>, vector<32x128xbf16>, vector<8x128xf32> -> vector<8x128xf32>
    %299 = arith.addf %298, %279 : vector<8x128xf32>
    %300 = arith.mulf %299, %20 : vector<8x128xf32>
    %301 = math.tanh %300 : vector<8x128xf32>
    %302 = arith.mulf %20, %301 : vector<8x128xf32>
    %303 = arith.addf %302, %23 : vector<8x128xf32>
    %304 = vector.extract_strided_slice %303 {offsets = [0, 0], sizes = [8, 32], strides = [1, 1]} : vector<8x128xf32> to vector<8x32xf32>
    %305 = vector.extract_strided_slice %303 {offsets = [0, 32], sizes = [8, 32], strides = [1, 1]} : vector<8x128xf32> to vector<8x32xf32>
    %306 = vector.extract_strided_slice %303 {offsets = [0, 64], sizes = [8, 32], strides = [1, 1]} : vector<8x128xf32> to vector<8x32xf32>
    %307 = vector.extract_strided_slice %303 {offsets = [0, 96], sizes = [8, 32], strides = [1, 1]} : vector<8x128xf32> to vector<8x32xf32>
    %308 = arith.mulf %305, %274 : vector<8x32xf32>
    %309 = arith.mulf %304, %306 : vector<8x32xf32>
    %310 = arith.addf %308, %309 : vector<8x32xf32>
    %311 = math.tanh %310 : vector<8x32xf32>
    %312 = arith.mulf %307, %311 : vector<8x32xf32>
    %cst_42 = arith.constant 0.000000e+00 : f32
    %313 = vector.broadcast %cst_42 : f32 to vector<8x32xf32>
    %314 = arith.maximumf %312, %313 : vector<8x32xf32>
    %c0_43 = arith.constant 0 : index
    %c0_44 = arith.constant 0 : index
    %315 = vector.load %arg7[%c0_43, %c0_44] : memref<1x32xf32, #tpu.memory_space<vmem>>, vector<1x32xf32>
    %316 = vector.broadcast %315 : vector<1x32xf32> to vector<8x32xf32>
    %317 = arith.mulf %314, %316 : vector<8x32xf32>
    %cst_45 = arith.constant dense<0.000000e+00> : vector<8xf32>
    %318 = vector.multi_reduction <add>, %317, %cst_45 [1] : vector<8x32xf32> to vector<8xf32>
    %319 = vector.shape_cast %318 : vector<8xf32> to vector<8x1xf32>
    %c0_46 = arith.constant 0 : index
    %c0_47 = arith.constant 0 : index
    %320 = vector.load %arg8[%c0_46, %c0_47] : memref<1x1xf32, #tpu.memory_space<vmem>>, vector<1x1xf32>
    %321 = vector.broadcast %320 : vector<1x1xf32> to vector<8x1xf32>
    %322 = arith.addf %319, %321 : vector<8x1xf32>
    %c0_48 = arith.constant 0 : index
    %c0_49 = arith.constant 0 : index
    %323 = vector.load %arg9[%c0_48, %c0_49] : memref<8x1xf32, #tpu.memory_space<vmem>>, vector<8x1xf32>
    tpu.vector_store %arg9[%c0_48, %c0_49], %322 {strides = array<i32>} : memref<8x1xf32, #tpu.memory_space<vmem>>, vector<8x1xf32>,
    return
  }
}

</mosaic_0001>

<bundles_post_ra>
// kernel: tpu_custom_call.1
= control target key start
LH: loop header
LB: loop body
LE: loop exit
PB: predicated region body
PF: predicated region fallthrough
CT: control target
= control target key end

     0   :  { %vm73_vm0 = vcmask 1044480   ;;  %vm48_vm1 = vcmask 39936   ;;  %v1102_v4 = vmov 0   ;;  %v134_v5 = vlaneseq  ;;  %s1106_s18 = smov 96   ;;  %s1462_s2 = inlined_call_operand.vmem [shape: bf16[32,128], index: 2, kind: input, shape index: {}]   ;;  %s1463_s1 = inlined_call_operand.vmem [shape: f32[5,128], index: 1, kind: input, shape index: {}]   ;;  %s1464_s0 = inlined_call_operand.vmem [shape: f32[64,5], index: 0, kind: input, shape index: {}]   ;;  %s1465_s3 = inlined_call_operand.vmem [shape: f32[1,128], index: 3, kind: input, shape index: {}]   ;;  %s1466_s4 = inlined_call_operand.vmem [shape: bf16[32,128], index: 4, kind: input, shape index: {}]   ;;  %s1467_s5 = inlined_call_operand.vmem [shape: bf16[32,128], index: 5, kind: input, shape index: {}]   ;;  %s1468_s6 = inlined_call_operand.vmem [shape: f32[1,128], index: 6, kind: input, shape index: {}]   ;;  %s1469_s7 = inlined_call_operand.vmem [shape: f32[1,32], index: 7, kind: input, shape index: {}]   ;;  %s1470_s8 = inlined_call_operand.<no memory space> [shape: f32[1,1], index: 8, kind: input, shape index: {}]   ;;  %s1471_s9 = inlined_call_operand.vmem [shape: f32[8,1], index: 9, kind: output, shape index: {}]  }
   0x1   :  { %v1160_v0 = vld [vmem:[%s1462_s2 + $0x8] sm:$0xff]  ;;  %v43_v1 = vld [vmem:[%s1463_s1] sm:$0x1f]  ;;  %v1103_v10 = vmov 0.5   ;;  %vm153_vm5 = vcmask 261120   ;;  %vm962_vm6 = vcmask 7168  }
   0x2   :  { %968 = vmatpush.msk.msra.mxu0 %vm73_vm0, %v43_v1  ;;  %v35_v2 = vld [vmem:[%s1464_s0] sm:$0xff]  ;;  %188 = vmatpush.bf16.msra.mxu2 %v1160_v0  ;;  %v135_v6 = vand.u32 127, %v134_v5  ;;  %v1202_v26 = vld [vmem:[%s1466_s4 + $0x8] sm:$0xff] }
   0x3   :  { %v1172_v3 = vld [vmem:[%s1462_s2] sm:$0xff]  ;;  %969 = vmatmul.msk.f32.vlgmr.msra.gmra.mxu0 %vm48_vm1, %v35_v2  ;;  %s1104_s2 = smov 64   ;;  %v1207_v27 = vld [vmem:[%s1467_s5 + $0x8] sm:$0xff]  ;;  %242 = vmatpush.bf16.msra.mxu3 %v1202_v26 }
   0x4   :  { %v1183_v7 = vld [vmem:[%s1465_s3] ss:$0 sm:$0xff]  ;;  %vm136_vm2 = vcmp.ge.s32.totalorder %v135_v6, 64  ;;  %vm137_vm3 = vcmp.lt.s32.totalorder %v135_v6, 96  ;;  %s1105_s3 = smov 32   ;;  %163 = vmatpush.bf16.msra.mxu1 %v1207_v27  ;;  %571 = vmatpush.bf16.msrb.mxu0 %v1207_v27  ;;  %v36_v33 = vld [vmem:[%s1464_s0 + $0x8] sm:$0xff] }
   0x5   :  { %vm138_vm4 = vmand %vm136_vm2, %vm137_vm3  ;;  %v1214_v28 = vld [vmem:[%s1466_s4] sm:$0xff] }
   0x6   :  { %189 = vmatpush.bf16.msra.mxu2 %v1172_v3  ;;  %v1186_v11 = vsel %vm138_vm4, 1.0, %v1103_v10  ;;  %v1189_v17 = vsel %vm138_vm4, 0.0, %v1103_v10  ;;  %v1224_v32 = vld [vmem:[%s1467_s5] sm:$0xff] }
   0x7   :  { %243 = vmatpush.bf16.msra.mxu3 %v1214_v28  ;;  %v1247_v38 = vld [vmem:[%s1468_s6] ss:$0 sm:$0xff] }
   0x8   :  { %164 = vmatpush.bf16.msra.mxu1 %v1224_v32  ;;  %572 = vmatpush.bf16.msrb.mxu0 %v1224_v32 }
   0x9   :  { %190 = vmatmul.bf16.vlgmr.msra.gmra.mxu2 %v1102_v4 }
   0xa   :  { %296 = vmatpush.bf16.msrb.mxu2 %v1160_v0 }
   0xb   :  { %338 = vmatpush.bf16.msrb.mxu3 %v1202_v26  ;;  %970 = vmatmul.msk.f32.gmra.mxu0 %vm48_vm1, %v36_v33 }
   0xc   :  { %283 = vmatpush.bf16.msrb.mxu1 %v1207_v27  ;;  %680 = vmatpush.bf16.msra.mxu0 %v1160_v0 }
   0xd   :  { %165 = vmatmul.bf16.vlgmr.msra.gmra.mxu1 %v1102_v4 }
   0xe   :  { %297 = vmatpush.bf16.msrb.mxu2 %v1172_v3 }
   0xf   :  { %339 = vmatpush.bf16.msrb.mxu3 %v1214_v28 }
  0x10   :  { %284 = vmatpush.bf16.msrb.mxu1 %v1224_v32  ;;  %681 = vmatpush.bf16.msra.mxu0 %v1172_v3 }
  0x12   :  { %392 = vmatpush.bf16.msra.mxu2 %v1160_v0 }
  0x14   :  { %379 = vmatpush.bf16.msra.mxu1 %v1207_v27 }
  0x16   :  { %393 = vmatpush.bf16.msra.mxu2 %v1172_v3 }
  0x18   :  { %380 = vmatpush.bf16.msra.mxu1 %v1224_v32 }
  0x80   :  { %v94_v8 = vpop.f32.mrf.mxu0 }
  0x81   :  { %v95_v9 = vadd.f32 %v1183_v7, %v94_v8 }
  0x88   :  { %v97_v37 = vpop.f32.mrf.mxu0 }
  0x89   :  { %v98_v39 = vadd.f32 %v1183_v7, %v97_v37 }
  0x8a   :  { %v166_v35 = vpop.f32.mrf.mxu1 }
  0x8b   :  { %v167_v40 = vadd.f32 %v1247_v38, %v166_v35 }
  0x8c   :  { %v191_v12 = vpop.f32.mrf.mxu2 }
  0x8d   :  { %v195_v13 = vadd.f32 %v191_v12, %v95_v9 }
  0x8f   :  { %v196_v14 = vmul.f32 %v195_v13, %v1186_v11  ;;  %v37_v13 = vld [vmem:[%s1464_s0 + $0x10] sm:$0xff] }
  0x90   :  { %971 = vmatmul.msk.f32.gmra.mxu0 %vm48_vm1, %v37_v13 }
  0x91   :  { %1038 = vtanh.f32 %v196_v14 }
  0x92   :  { %v168_v36 = vpop.f32.mrf.mxu1 }
  0x94   :  { %v193_v15 = vpop.f32.mrf.mxu2 }
  0x97   :  { %v1039_v16 = vpop.eup %1038 }
  0x98   :  { %v198_v18 = vmul.f32 %v1039_v16, %v1186_v11 }
  0x9a   :  { %v199_v19 = vadd.f32 %v198_v18, %v1189_v17 }
  0x9c   :  { %202 = vrot.lane.b32.xlu0 %v199_v19, %s1104_s2  ;;  %v200_v22 = vmul.f32 0.0, %v199_v19 }
 0x10d   :  { %v100_v16 = vpop.f32.mrf.mxu0 }
 0x10e   :  { %v203_v20 = vpop.permute.xlu0 %202  ;;  %v101_v18 = vadd.f32 %v1183_v7, %v100_v16 }
 0x10f   :  { %v205_v21 = vmul.f32 %v203_v20, %v199_v19 }
 0x111   :  { %207 = vrot.lane.b32.xlu0 %v205_v21, %s1105_s3 }
 0x183   :  { %v208_v23 = vpop.permute.xlu0 %207 }
 0x184   :  { %v1195_v24 = vadd.f32 %v208_v23, %v200_v22 }
 0x186   :  { %1040 = vtanh.f32 %v1195_v24 }
 0x18c   :  { %v1041_v25 = vpop.eup %1040 }
 0x18d   :  { %213 = vrot.lane.b32.xlu1 %v1041_v25, %s1104_s2 }
 0x1ff   :  { %v214_v29 = vpop.permute.xlu1 %213 }
 0x200   :  { %v216_v30 = vmul.f32 %v214_v29, %v199_v19 }
 0x202   :  { %v217_v31 = vpack.c.bf16 %v216_v30, %v216_v30 }
 0x204   :  { %219 = vrot.lane.b32.xlu1 %v217_v31, %s1105_s3 }
 0x276   :  { %v220_v34 = vpop.permute.xlu1 %219 }
 0x277   :  { %1001 = vmatmul.msk.bf16.vlgmr.msra.gmra.mxu3 %vm153_vm5, %v220_v34  ;;  %1003 = vmatmul.msk.bf16.vlgmr.msrb.gmra.mxu2 %vm153_vm5, %v220_v34 }
 0x278   :  { %488 = vmatpush.bf16.msrb.mxu2 %v1160_v0  ;;  %434 = vmatpush.bf16.msra.mxu3 %v1202_v26 }
 0x27c   :  { %489 = vmatpush.bf16.msrb.mxu2 %v1172_v3  ;;  %435 = vmatpush.bf16.msra.mxu3 %v1214_v28 }
 0x2fa   :  { %v245_v41 = vpop.f32.mrf.mxu3  ;;  %v299_v42 = vpop.f32.mrf.mxu2 }
 0x2fb   :  { %v303_v43 = vadd.f32 %v299_v42, %v98_v39  ;;  %v246_v44 = vadd.f32 %v245_v41, %v167_v40 }
 0x2fd   :  { %v304_v45 = vmul.f32 %v303_v43, %v1186_v11  ;;  %v249_v46 = vmul.f32 %v246_v44, %v1186_v11 }
 0x2ff   :  { %1042 = vtanh.f32 %v304_v45 }
 0x300   :  { %1044 = vtanh.f32 %v249_v46 }
 0x302   :  { %v247_v47 = vpop.f32.mrf.mxu3  ;;  %v301_v48 = vpop.f32.mrf.mxu2 }
 0x305   :  { %v1043_v49 = vpop.eup %1042 }
 0x306   :  { %v306_v50 = vmul.f32 %v1043_v49, %v1186_v11  ;;  %v1045_v52 = vpop.eup %1044 }
 0x307   :  { %v251_v53 = vmul.f32 %v1045_v52, %v1186_v11 }
 0x308   :  { %v307_v51 = vadd.f32 %v306_v50, %v1189_v17 }
 0x309   :  { %v252_v54 = vadd.f32 %v251_v53, %v1189_v17 }
 0x30a   :  { %310 = vrot.lane.b32.xlu2 %v307_v51, %s1104_s2  ;;  %v308_v59 = vmul.f32 %v307_v51, %v1195_v24 }
 0x30b   :  { %v253_v62 = vmul.f32 0.0, %v252_v54 }
 0x312   :  { %255 = vrot.lane.b32.xlu2 %v252_v54, %s1104_s2 }
 0x364   :  { %v311_v55 = vpop.permute.xlu2 %310 }
 0x365   :  { %v313_v56 = vmul.f32 %v311_v55, %v307_v51 }
 0x367   :  { %315 = vrot.lane.b32.xlu0 %v313_v56, %s1105_s3 }
 0x36c   :  { %v256_v57 = vpop.permute.xlu2 %255 }
 0x36d   :  { %v258_v58 = vmul.f32 %v256_v57, %v252_v54 }
 0x36f   :  { %260 = vrot.lane.b32.xlu1 %v258_v58, %s1105_s3 }
 0x3d9   :  { %v316_v60 = vpop.permute.xlu0 %315 }
 0x3da   :  { %v318_v61 = vadd.f32 %v316_v60, %v308_v59  ;;  %v38_v59 = vld [vmem:[%s1464_s0 + $0x18] sm:$0xff] }
 0x3db   :  { %972 = vmatmul.msk.f32.gmra.mxu0 %vm48_vm1, %v38_v59 }
 0x3dc   :  { %1046 = vtanh.f32 %v318_v61 }
 0x3e1   :  { %v261_v63 = vpop.permute.xlu1 %260 }
 0x3e2   :  { %v1047_v1 = vpop.eup %1046  ;;  %v263_v2 = vadd.f32 %v261_v63, %v253_v62 }
 0x3e3   :  { %321 = vrot.lane.b32.xlu2 %v1047_v1, %s1104_s2 }
 0x3e4   :  { %1048 = vtanh.f32 %v263_v2 }
 0x3ea   :  { %v1049_v4 = vpop.eup %1048 }
 0x3eb   :  { %266 = vrot.lane.b32.xlu0 %v1049_v4, %s1104_s2 }
 0x43d   :  { %v322_v5 = vpop.permute.xlu2 %321 }
 0x43e   :  { %v324_v6 = vmul.f32 %v322_v5, %v307_v51 }
 0x440   :  { %v325_v8 = vpack.c.bf16 %v324_v6, %v324_v6 }
 0x442   :  { %327 = vrot.lane.b32.xlu1 %v325_v8, %s1105_s3 }
 0x458   :  { %v103_v62 = vpop.f32.mrf.mxu0 }
 0x459   :  { %v104_v63 = vadd.f32 %v1183_v7, %v103_v62 }
 0x45d   :  { %v267_v9 = vpop.permute.xlu0 %266 }
 0x45e   :  { %v269_v10 = vmul.f32 %v267_v9, %v252_v54 }
 0x460   :  { %v270_v12 = vpack.c.bf16 %v269_v10, %v269_v10 }
 0x462   :  { %272 = vrot.lane.b32.xlu2 %v270_v12, %s1105_s3 }
 0x4b4   :  { %v328_v14 = vpop.permute.xlu1 %327 }
 0x4b5   :  { %1004 = vmatmul.msk.bf16.vlgmr.msrb.gmra.mxu3 %vm153_vm5, %v328_v14  ;;  %1006 = vmatmul.msk.bf16.vlgmr.msra.gmra.mxu2 %vm153_vm5, %v328_v14 }
 0x4b6   :  { %530 = vmatpush.bf16.msrb.mxu3 %v1202_v26  ;;  %626 = vmatpush.bf16.msra.mxu2 %v1202_v26 }
 0x4ba   :  { %531 = vmatpush.bf16.msrb.mxu3 %v1214_v28  ;;  %627 = vmatpush.bf16.msra.mxu2 %v1214_v28 }
 0x4bc   :  { %v273_v15 = vpop.permute.xlu2 %272 }
 0x4bd   :  { %1002 = vmatmul.msk.bf16.vlgmr.msrb.gmra.mxu1 %vm153_vm5, %v273_v15 }
 0x4be   :  { %475 = vmatpush.bf16.msrb.mxu1 %v1207_v27 }
 0x4c2   :  { %476 = vmatpush.bf16.msrb.mxu1 %v1224_v32 }
 0x538   :  { %v341_v19 = vpop.f32.mrf.mxu3  ;;  %v395_v20 = vpop.f32.mrf.mxu2 }
 0x539   :  { %v399_v21 = vadd.f32 %v395_v20, %v101_v18 }
 0x53a   :  { %v286_v22 = vpop.f32.mrf.mxu1 }
 0x53b   :  { %v400_v23 = vmul.f32 %v399_v21, %v1186_v11  ;;  %v287_v24 = vadd.f32 %v1247_v38, %v286_v22 }
 0x53d   :  { %1050 = vtanh.f32 %v400_v23  ;;  %v342_v25 = vadd.f32 %v341_v19, %v287_v24 }
 0x53f   :  { %v345_v29 = vmul.f32 %v342_v25, %v1186_v11 }
 0x540   :  { %v343_v30 = vpop.f32.mrf.mxu3  ;;  %v397_v31 = vpop.f32.mrf.mxu2 }
 0x541   :  { %1052 = vtanh.f32 %v345_v29 }
 0x542   :  { %v288_v33 = vpop.f32.mrf.mxu1 }
 0x543   :  { %v1051_v34 = vpop.eup %1050 }
 0x544   :  { %v402_v35 = vmul.f32 %v1051_v34, %v1186_v11 }
 0x546   :  { %v403_v36 = vadd.f32 %v402_v35, %v1189_v17 }
 0x547   :  { %v1053_v37 = vpop.eup %1052 }
 0x548   :  { %406 = vrot.lane.b32.xlu0 %v403_v36, %s1104_s2  ;;  %v347_v39 = vmul.f32 %v1053_v37, %v1186_v11  ;;  %v404_v45 = vmul.f32 %v403_v36, %v318_v61 }
 0x54a   :  { %v348_v40 = vadd.f32 %v347_v39, %v1189_v17 }
 0x54c   :  { %351 = vrot.lane.b32.xlu1 %v348_v40, %s1104_s2  ;;  %v349_v49 = vmul.f32 %v348_v40, %v263_v2 }
 0x5ba   :  { %v407_v41 = vpop.permute.xlu0 %406 }
 0x5bb   :  { %v409_v42 = vmul.f32 %v407_v41, %v403_v36 }
 0x5bd   :  { %411 = vrot.lane.b32.xlu2 %v409_v42, %s1105_s3 }
 0x5be   :  { %v352_v43 = vpop.permute.xlu1 %351 }
 0x5bf   :  { %v354_v44 = vmul.f32 %v352_v43, %v348_v40 }
 0x5c1   :  { %356 = vrot.lane.b32.xlu0 %v354_v44, %s1105_s3 }
 0x617   :  { %v412_v46 = vpop.permute.xlu2 %411 }
 0x618   :  { %v414_v47 = vadd.f32 %v412_v46, %v404_v45  ;;  %v39_v45 = vld [vmem:[%s1464_s0 + $0x20] sm:$0xff] }
 0x619   :  { %973 = vmatmul.msk.f32.gmra.mxu0 %vm48_vm1, %v39_v45 }
 0x61a   :  { %1054 = vtanh.f32 %v414_v47 }
 0x620   :  { %v1055_v48 = vpop.eup %1054 }
 0x621   :  { %417 = vrot.lane.b32.xlu1 %v1055_v48, %s1104_s2 }
 0x633   :  { %v357_v50 = vpop.permute.xlu0 %356 }
 0x634   :  { %v359_v51 = vadd.f32 %v357_v50, %v349_v49 }
 0x636   :  { %1056 = vtanh.f32 %v359_v51 }
 0x63c   :  { %v1057_v52 = vpop.eup %1056 }
 0x63d   :  { %362 = vrot.lane.b32.xlu2 %v1057_v52, %s1104_s2 }
 0x693   :  { %v418_v53 = vpop.permute.xlu1 %417 }
 0x694   :  { %v420_v54 = vmul.f32 %v418_v53, %v403_v36 }
 0x696   :  { %v421_v55 = vpack.c.bf16 %v420_v54, %v420_v54  ;;  %v106_v50 = vpop.f32.mrf.mxu0 }
 0x697   :  { %v363_v56 = vpop.permute.xlu2 %362 }
 0x698   :  { %v365_v57 = vmul.f32 %v363_v56, %v348_v40  ;;  %423 = vrot.lane.b32.xlu0 %v421_v55, %s1105_s3 }
 0x69a   :  { %v366_v58 = vpack.c.bf16 %v365_v57, %v365_v57 }
 0x69c   :  { %368 = vrot.lane.b32.xlu1 %v366_v58, %s1105_s3 }
 0x70a   :  { %v424_v60 = vpop.permute.xlu0 %423 }
 0x70b   :  { %1007 = vmatmul.msk.bf16.vlgmr.msra.gmra.mxu3 %vm153_vm5, %v424_v60  ;;  %1009 = vmatmul.msk.bf16.vlgmr.msrb.gmra.mxu2 %vm153_vm5, %v424_v60 }
 0x70c   :  { %667 = vmatpush.bf16.msra.mxu3 %v1207_v27  ;;  %763 = vmatpush.bf16.msrb.mxu2 %v1207_v27 }
 0x70e   :  { %v369_v61 = vpop.permute.xlu1 %368 }
 0x70f   :  { %1005 = vmatmul.msk.bf16.vlgmr.msra.gmra.mxu1 %vm153_vm5, %v369_v61 }
 0x710   :  { %584 = vmatpush.bf16.msra.mxu1 %v1160_v0  ;;  %668 = vmatpush.bf16.msra.mxu3 %v1224_v32 }
 0x711   :  { %764 = vmatpush.bf16.msrb.mxu2 %v1224_v32 }
 0x714   :  { %585 = vmatpush.bf16.msra.mxu1 %v1172_v3 }
 0x78c   :  { %v382_v1 = vpop.f32.mrf.mxu1 }
 0x78d   :  { %v383_v2 = vadd.f32 %v1247_v38, %v382_v1 }
 0x78e   :  { %v437_v4 = vpop.f32.mrf.mxu3  ;;  %v491_v5 = vpop.f32.mrf.mxu2 }
 0x78f   :  { %v438_v6 = vadd.f32 %v437_v4, %v383_v2  ;;  %v495_v8 = vadd.f32 %v491_v5, %v104_v63 }
 0x791   :  { %v441_v9 = vmul.f32 %v438_v6, %v1186_v11  ;;  %v496_v10 = vmul.f32 %v495_v8, %v1186_v11 }
 0x793   :  { %1058 = vtanh.f32 %v441_v9 }
 0x794   :  { %1060 = vtanh.f32 %v496_v10  ;;  %v384_v12 = vpop.f32.mrf.mxu1 }
 0x796   :  { %v439_v13 = vpop.f32.mrf.mxu3  ;;  %v493_v14 = vpop.f32.mrf.mxu2 }
 0x799   :  { %v1059_v15 = vpop.eup %1058 }
 0x79a   :  { %v1061_v16 = vpop.eup %1060  ;;  %v443_v18 = vmul.f32 %v1059_v15, %v1186_v11 }
 0x79b   :  { %v498_v19 = vmul.f32 %v1061_v16, %v1186_v11 }
 0x79c   :  { %v444_v20 = vadd.f32 %v443_v18, %v1189_v17 }
 0x79d   :  { %v499_v21 = vadd.f32 %v498_v19, %v1189_v17 }
 0x79e   :  { %447 = vrot.lane.b32.xlu2 %v444_v20, %s1104_s2  ;;  %v445_v29 = vmul.f32 %v444_v20, %v359_v51  ;;  %v107_v51 = vadd.f32 %v1183_v7, %v106_v50 }
 0x79f   :  { %502 = vrot.lane.b32.xlu0 %v499_v21, %s1104_s2  ;;  %v500_v31 = vmul.f32 %v499_v21, %v414_v47 }
 0x7f8   :  { %v448_v22 = vpop.permute.xlu2 %447 }
 0x7f9   :  { %v450_v23 = vmul.f32 %v448_v22, %v444_v20 }
 0x7fb   :  { %452 = vrot.lane.b32.xlu1 %v450_v23, %s1105_s3 }
 0x811   :  { %v503_v24 = vpop.permute.xlu0 %502 }
 0x812   :  { %v505_v25 = vmul.f32 %v503_v24, %v499_v21  ;;  %v40_v24 = vld [vmem:[%s1464_s0 + $0x28] sm:$0xff] }
 0x813   :  { %974 = vmatmul.msk.f32.gmra.mxu0 %vm48_vm1, %v40_v24 }
 0x814   :  { %507 = vrot.lane.b32.xlu2 %v505_v25, %s1105_s3  ;;  %v41_v25 = vld [vmem:[%s1464_s0 + $0x30] sm:$0xff] }
 0x81b   :  { %975 = vmatmul.msk.f32.gmra.mxu0 %vm48_vm1, %v41_v25 }
 0x86d   :  { %v453_v30 = vpop.permute.xlu1 %452 }
 0x86e   :  { %v1320_v33 = vadd.f32 %v453_v30, %v445_v29  ;;  %v508_v34 = vpop.permute.xlu2 %507  ;;  %v42_v29 = vld [vmem:[%s1464_s0 + $0x38] sm:$0xff] }
 0x86f   :  { %v510_v35 = vadd.f32 %v508_v34, %v500_v31  ;;  %976 = vmatmul.msk.f32.gmra.mxu0 %vm48_vm1, %v42_v29 }
 0x870   :  { %1062 = vtanh.f32 %v1320_v33 }
 0x871   :  { %1064 = vtanh.f32 %v510_v35 }
 0x876   :  { %v1063_v36 = vpop.eup %1062 }
 0x877   :  { %v1065_v37 = vpop.eup %1064  ;;  %458 = vrot.lane.b32.xlu0 %v1063_v36, %s1104_s2 }
 0x878   :  { %513 = vrot.lane.b32.xlu1 %v1065_v37, %s1104_s2 }
 0x8e9   :  { %v459_v39 = vpop.permute.xlu0 %458 }
 0x8ea   :  { %v514_v40 = vpop.permute.xlu1 %513  ;;  %v461_v41 = vmul.f32 %v459_v39, %v444_v20 }
 0x8eb   :  { %v516_v42 = vmul.f32 %v514_v40, %v499_v21 }
 0x8ec   :  { %v462_v43 = vpack.c.bf16 %v461_v41, %v461_v41 }
 0x8ed   :  { %v517_v44 = vpack.c.bf16 %v516_v42, %v516_v42 }
 0x8ee   :  { %464 = vrot.lane.b32.xlu2 %v462_v43, %s1105_s3 }
 0x8ef   :  { %519 = vrot.lane.b32.xlu0 %v517_v44, %s1105_s3 }
 0x948   :  { %v465_v46 = vpop.permute.xlu2 %464 }
 0x949   :  { %1008 = vmatmul.msk.bf16.vlgmr.msrb.gmra.mxu1 %vm153_vm5, %v465_v46 }
 0x94a   :  { %722 = vmatpush.bf16.msrb.mxu1 %v1202_v26 }
 0x94e   :  { %723 = vmatpush.bf16.msrb.mxu1 %v1214_v28 }
 0x961   :  { %v520_v47 = vpop.permute.xlu0 %519 }
 0x962   :  { %1010 = vmatmul.msk.bf16.vlgmr.msrb.gmra.mxu3 %vm153_vm5, %v520_v47  ;;  %1012 = vmatmul.msk.bf16.vlgmr.msra.gmra.mxu1 %vm153_vm5, %v520_v47 }
 0x963   :  { %776 = vmatpush.bf16.msrb.mxu3 %v1160_v0  ;;  %859 = vmatpush.bf16.msra.mxu1 %v1207_v27 }
 0x967   :  { %777 = vmatpush.bf16.msrb.mxu3 %v1172_v3  ;;  %860 = vmatpush.bf16.msra.mxu1 %v1224_v32 }
 0x9c6   :  { %v478_v48 = vpop.f32.mrf.mxu1 }
 0x9c7   :  { %v479_v55 = vadd.f32 %v1247_v38, %v478_v48 }
 0x9ce   :  { %v480_v49 = vpop.f32.mrf.mxu1 }
 0x9df   :  { %v587_v52 = vpop.f32.mrf.mxu1 }
 0x9e0   :  { %v591_v53 = vadd.f32 %v587_v52, %v107_v51 }
 0x9e2   :  { %v592_v54 = vmul.f32 %v591_v53, %v1186_v11 }
 0x9e4   :  { %1066 = vtanh.f32 %v592_v54 }
 0x9e5   :  { %v533_v56 = vpop.f32.mrf.mxu3 }
 0x9e6   :  { %v534_v57 = vadd.f32 %v533_v56, %v479_v55 }
 0x9e7   :  { %v589_v58 = vpop.f32.mrf.mxu1 }
 0x9e8   :  { %v537_v27 = vmul.f32 %v534_v57, %v1186_v11 }
 0x9ea   :  { %v1067_v59 = vpop.eup %1066  ;;  %1068 = vtanh.f32 %v537_v27 }
 0x9eb   :  { %v594_v32 = vmul.f32 %v1067_v59, %v1186_v11 }
 0x9ed   :  { %v535_v60 = vpop.f32.mrf.mxu3  ;;  %v595_v61 = vadd.f32 %v594_v32, %v1189_v17 }
 0x9ef   :  { %598 = vrot.lane.b32.xlu2 %v595_v61, %s1104_s2  ;;  %v596_v8 = vmul.f32 %v595_v61, %v510_v35 }
 0x9f0   :  { %v1069_v62 = vpop.eup %1068 }
 0x9f1   :  { %v539_v63 = vmul.f32 %v1069_v62, %v1186_v11 }
 0x9f3   :  { %v540_v1 = vadd.f32 %v539_v63, %v1189_v17 }
 0x9f5   :  { %543 = vrot.lane.b32.xlu1 %v540_v1, %s1104_s2  ;;  %v541_v13 = vmul.f32 %v540_v1, %v1320_v33  ;;  %v109_v33 = vpop.f32.mrf.mxu0 }
 0x9f6   :  { %v110_v44 = vadd.f32 %v1183_v7, %v109_v33 }
 0x9fd   :  { %v1379_v35 = vpop.f32.mrf.mxu0 }
 0xa05   :  { %v1381_v37 = vpop.f32.mrf.mxu0 }
 0xa49   :  { %v599_v2 = vpop.permute.xlu2 %598 }
 0xa4a   :  { %v601_v4 = vmul.f32 %v599_v2, %v595_v61 }
 0xa4c   :  { %603 = vrot.lane.b32.xlu1 %v601_v4, %s1105_s3 }
 0xa67   :  { %v544_v5 = vpop.permute.xlu1 %543 }
 0xa68   :  { %v546_v6 = vmul.f32 %v544_v5, %v540_v1 }
 0xa6a   :  { %548 = vrot.lane.b32.xlu0 %v546_v6, %s1105_s3 }
 0xabe   :  { %v604_v9 = vpop.permute.xlu1 %603 }
 0xabf   :  { %v1352_v10 = vadd.f32 %v604_v9, %v596_v8 }
 0xac1   :  { %1070 = vtanh.f32 %v1352_v10 }
 0xac7   :  { %v1071_v12 = vpop.eup %1070 }
 0xac8   :  { %609 = vrot.lane.b32.xlu0 %v1071_v12, %s1104_s2 }
 0xadc   :  { %v549_v14 = vpop.permute.xlu0 %548 }
 0xadd   :  { %v551_v15 = vadd.f32 %v549_v14, %v541_v13 }
 0xadf   :  { %1072 = vtanh.f32 %v551_v15 }
 0xae5   :  { %v1073_v16 = vpop.eup %1072 }
 0xae6   :  { %554 = vrot.lane.b32.xlu2 %v1073_v16, %s1104_s2 }
 0xb3a   :  { %v610_v18 = vpop.permute.xlu0 %609 }
 0xb3b   :  { %v612_v19 = vmul.f32 %v610_v18, %v595_v61  ;;  %v113_v18 = vadd.f32 %v1183_v7, %v1379_v35 }
 0xb3d   :  { %v613_v20 = vpack.c.bf16 %v612_v19, %v612_v19 }
 0xb3f   :  { %615 = vrot.lane.b32.xlu2 %v613_v20, %s1105_s3 }
 0xb40   :  { %v555_v21 = vpop.permute.xlu2 %554 }
 0xb41   :  { %v557_v22 = vmul.f32 %v555_v21, %v540_v1 }
 0xb43   :  { %v558_v23 = vpack.c.bf16 %v557_v22, %v557_v22 }
 0xb45   :  { %560 = vrot.lane.b32.xlu1 %v558_v23, %s1105_s3 }
 0xb99   :  { %v616_v30 = vpop.permute.xlu2 %615 }
 0xb9a   :  { %1013 = vmatmul.msk.bf16.vlgmr.msra.gmra.mxu2 %vm153_vm5, %v616_v30 }
 0xb9b   :  { %872 = vmatpush.bf16.msra.mxu2 %v1160_v0 }
 0xb9f   :  { %873 = vmatpush.bf16.msra.mxu2 %v1172_v3 }
 0xbb7   :  { %v561_v31 = vpop.permute.xlu1 %560 }
 0xbb8   :  { %1011 = vmatmul.msk.bf16.vlgmr.msrb.gmra.mxu0 %vm153_vm5, %v561_v31 }
 0xbb9   :  { %818 = vmatpush.bf16.msrb.mxu0 %v1202_v26 }
 0xbbd   :  { %819 = vmatpush.bf16.msrb.mxu0 %v1214_v28 }
 0xbc8   :  { %1015 = vmatmul.msk.bf16.vlgmr.msra.gmra.mxu0 %vm153_vm5, %v616_v30 }
 0xc1d   :  { %v629_v34 = vpop.f32.mrf.mxu2 }
 0xc25   :  { %v631_v36 = vpop.f32.mrf.mxu2 }
 0xc35   :  { %v574_v39 = vpop.f32.mrf.mxu0 }
 0xc36   :  { %v575_v0 = vadd.f32 %v1247_v38, %v574_v39 }
 0xc38   :  { %v630_v3 = vadd.f32 %v629_v34, %v575_v0 }
 0xc3a   :  { %v633_v40 = vmul.f32 %v630_v3, %v1186_v11 }
 0xc3c   :  { %1074 = vtanh.f32 %v633_v40 }
 0xc3d   :  { %v576_v41 = vpop.f32.mrf.mxu0 }
 0xc42   :  { %v1075_v42 = vpop.eup %1074 }
 0xc43   :  { %v635_v43 = vmul.f32 %v1075_v42, %v1186_v11 }
 0xc45   :  { %v683_v45 = vpop.f32.mrf.mxu0  ;;  %v636_v46 = vadd.f32 %v635_v43, %v1189_v17 }
 0xc46   :  { %v687_v47 = vadd.f32 %v683_v45, %v110_v44 }
 0xc47   :  { %639 = vrot.lane.b32.xlu0 %v636_v46, %s1104_s2  ;;  %v637_v57 = vmul.f32 %v636_v46, %v551_v15 }
 0xc48   :  { %v688_v48 = vmul.f32 %v687_v47, %v1186_v11 }
 0xc4a   :  { %1076 = vtanh.f32 %v688_v48 }
 0xc4d   :  { %v685_v49 = vpop.f32.mrf.mxu0 }
 0xc50   :  { %v1077_v50 = vpop.eup %1076 }
 0xc51   :  { %v690_v51 = vmul.f32 %v1077_v50, %v1186_v11 }
 0xc53   :  { %v691_v52 = vadd.f32 %v690_v51, %v1189_v17 }
 0xc55   :  { %694 = vrot.lane.b32.xlu1 %v691_v52, %s1104_s2  ;;  %v692_v32 = vmul.f32 %v691_v52, %v1352_v10 }
 0xcb9   :  { %v640_v53 = vpop.permute.xlu0 %639 }
 0xcba   :  { %v642_v54 = vmul.f32 %v640_v53, %v636_v46 }
 0xcbc   :  { %644 = vrot.lane.b32.xlu2 %v642_v54, %s1105_s3 }
 0xcc7   :  { %v695_v55 = vpop.permute.xlu1 %694 }
 0xcc8   :  { %v697_v56 = vmul.f32 %v695_v55, %v691_v52 }
 0xcca   :  { %699 = vrot.lane.b32.xlu0 %v697_v56, %s1105_s3 }
 0xd16   :  { %v645_v58 = vpop.permute.xlu2 %644 }
 0xd17   :  { %v647_v27 = vadd.f32 %v645_v58, %v637_v57  ;;  %v116_v58 = vadd.f32 %v1183_v7, %v1381_v37 }
 0xd19   :  { %1078 = vtanh.f32 %v647_v27 }
 0xd1f   :  { %v1079_v59 = vpop.eup %1078 }
 0xd20   :  { %650 = vrot.lane.b32.xlu1 %v1079_v59, %s1104_s2 }
 0xd3c   :  { %v700_v60 = vpop.permute.xlu0 %699 }
 0xd3d   :  { %v702_v61 = vadd.f32 %v700_v60, %v692_v32 }
 0xd3f   :  { %1080 = vtanh.f32 %v702_v61 }
 0xd45   :  { %v1081_v62 = vpop.eup %1080 }
 0xd46   :  { %705 = vrot.lane.b32.xlu2 %v1081_v62, %s1104_s2 }
 0xd92   :  { %v651_v63 = vpop.permute.xlu1 %650 }
 0xd93   :  { %v653_v1 = vmul.f32 %v651_v63, %v636_v46 }
 0xd95   :  { %v654_v2 = vpack.c.bf16 %v653_v1, %v653_v1 }
 0xd97   :  { %656 = vrot.lane.b32.xlu0 %v654_v2, %s1105_s3 }
 0xda0   :  { %v706_v4 = vpop.permute.xlu2 %705 }
 0xda1   :  { %v708_v5 = vmul.f32 %v706_v4, %v691_v52 }
 0xda3   :  { %v709_v6 = vpack.c.bf16 %v708_v5, %v708_v5 }
 0xda5   :  { %711 = vrot.lane.b32.xlu1 %v709_v6, %s1105_s3 }
 0xe09   :  { %v657_v8 = vpop.permute.xlu0 %656 }
 0xe0a   :  { %1014 = vmatmul.msk.bf16.vlgmr.msra.gmra.mxu3 %vm153_vm5, %v657_v8 }
 0xe0b   :  { %914 = vmatpush.bf16.msra.mxu3 %v1202_v26 }
 0xe0f   :  { %915 = vmatpush.bf16.msra.mxu3 %v1214_v28 }
 0xe17   :  { %v712_v9 = vpop.permute.xlu1 %711 }
 0xe18   :  { %1016 = vmatmul.msk.bf16.vlgmr.msrb.gmra.mxu1 %vm153_vm5, %v712_v9 }
 0xe1a   :  { %1018 = vmatmul.msk.bf16.vlgmr.msrb.gmra.mxu3 %vm153_vm5, %v712_v9 }
 0xe8d   :  { %v670_v10 = vpop.f32.mrf.mxu3 }
 0xe8e   :  { %v671_v12 = vadd.f32 %v1247_v38, %v670_v10 }
 0xe95   :  { %v672_v13 = vpop.f32.mrf.mxu3  ;;  %v725_v14 = vpop.f32.mrf.mxu1 }
 0xe96   :  { %v726_v15 = vadd.f32 %v725_v14, %v671_v12 }
 0xe98   :  { %v729_v16 = vmul.f32 %v726_v15, %v1186_v11 }
 0xe9a   :  { %1082 = vtanh.f32 %v729_v16 }
 0xe9d   :  { %v727_v26 = vpop.f32.mrf.mxu1  ;;  %v779_v19 = vpop.f32.mrf.mxu3 }
 0xe9e   :  { %v783_v28 = vadd.f32 %v779_v19, %v113_v18 }
 0xea0   :  { %v1083_v20 = vpop.eup %1082  ;;  %v784_v21 = vmul.f32 %v783_v28, %v1186_v11 }
 0xea1   :  { %v731_v22 = vmul.f32 %v1083_v20, %v1186_v11 }
 0xea2   :  { %1084 = vtanh.f32 %v784_v21 }
 0xea3   :  { %v732_v23 = vadd.f32 %v731_v22, %v1189_v17 }
 0xea5   :  { %v781_v24 = vpop.f32.mrf.mxu3  ;;  %735 = vrot.lane.b32.xlu2 %v732_v23, %s1104_s2  ;;  %v733_v36 = vmul.f32 %v732_v23, %v647_v27 }
 0xea8   :  { %v1085_v25 = vpop.eup %1084 }
 0xea9   :  { %v786_v29 = vmul.f32 %v1085_v25, %v1186_v11 }
 0xeab   :  { %v787_v30 = vadd.f32 %v786_v29, %v1189_v17 }
 0xead   :  { %790 = vrot.lane.b32.xlu0 %v787_v30, %s1104_s2  ;;  %v788_v3 = vmul.f32 %v787_v30, %v702_v61 }
 0xeff   :  { %v736_v31 = vpop.permute.xlu2 %735 }
 0xf00   :  { %v738_v33 = vmul.f32 %v736_v31, %v732_v23 }
 0xf02   :  { %740 = vrot.lane.b32.xlu1 %v738_v33, %s1105_s3 }
 0xf1f   :  { %v791_v34 = vpop.permute.xlu0 %790 }
 0xf20   :  { %v793_v35 = vmul.f32 %v791_v34, %v787_v30 }
 0xf22   :  { %795 = vrot.lane.b32.xlu2 %v793_v35, %s1105_s3 }
 0xf74   :  { %v741_v39 = vpop.permute.xlu1 %740 }
 0xf75   :  { %v743_v0 = vadd.f32 %v741_v39, %v733_v36 }
 0xf77   :  { %1086 = vtanh.f32 %v743_v0 }
 0xf7c   :  { %v796_v40 = vpop.permute.xlu2 %795 }
 0xf7d   :  { %v1087_v41 = vpop.eup %1086  ;;  %v798_v42 = vadd.f32 %v796_v40, %v788_v3  ;;  %v1036_v3 = vld [vmem:[%s1469_s7] ss:$0 sm:$0xff] }
 0xf7e   :  { %746 = vrot.lane.b32.xlu0 %v1087_v41, %s1104_s2 }
 0xf7f   :  { %1088 = vtanh.f32 %v798_v42 }
 0xf85   :  { %v1089_v43 = vpop.eup %1088 }
 0xf86   :  { %801 = vrot.lane.b32.xlu1 %v1089_v43, %s1104_s2 }
 0xff0   :  { %v747_v44 = vpop.permute.xlu0 %746 }
 0xff1   :  { %v749_v45 = vmul.f32 %v747_v44, %v732_v23 }
 0xff3   :  { %v750_v46 = vpack.c.bf16 %v749_v45, %v749_v45 }
 0xff5   :  { %752 = vrot.lane.b32.xlu2 %v750_v46, %s1105_s3 }
 0xff8   :  { %v802_v47 = vpop.permute.xlu1 %801 }
 0xff9   :  { %v804_v48 = vmul.f32 %v802_v47, %v787_v30 }
 0xffb   :  { %v805_v49 = vpack.c.bf16 %v804_v48, %v804_v48  ;;  %v14_v48 = vstv %s1470_s8 }
 0xffc   :  { %15 = vst [vmem:[#allocation2] sm:$0x1] %v14_v48 }
 0xffd   :  { %807 = vrot.lane.b32.xlu0 %v805_v49, %s1105_s3 }
0x104f   :  { %v753_v50 = vpop.permute.xlu2 %752 }
0x1050   :  { %1017 = vmatmul.msk.bf16.vlgmr.msrb.gmra.mxu2 %vm153_vm5, %v753_v50 }
0x106f   :  { %v808_v51 = vpop.permute.xlu0 %807 }
0x1070   :  { %1019 = vmatmul.msk.bf16.vlgmr.msrb.gmra.mxu0 %vm153_vm5, %v808_v51  ;;  %1021 = vmatmul.msk.bf16.vlgmr.msra.gmra.mxu2 %vm153_vm5, %v808_v51  ;;  %v1037_v51 = vld [vmem:[#allocation2] ss:$0 sm:$0xff] }
0x10d3   :  { %v766_v52 = vpop.f32.mrf.mxu2 }
0x10d4   :  { %v767_v54 = vadd.f32 %v1247_v38, %v766_v52 }
0x10db   :  { %v768_v53 = vpop.f32.mrf.mxu2 }
0x10ed   :  { %v821_v55 = vpop.f32.mrf.mxu0 }
0x10ee   :  { %v822_v56 = vadd.f32 %v821_v55, %v767_v54 }
0x10f0   :  { %v825_v57 = vmul.f32 %v822_v56, %v1186_v11 }
0x10f2   :  { %1090 = vtanh.f32 %v825_v57 }
0x10f3   :  { %v875_v27 = vpop.f32.mrf.mxu2 }
0x10f4   :  { %v879_v59 = vadd.f32 %v875_v27, %v116_v58 }
0x10f5   :  { %v823_v32 = vpop.f32.mrf.mxu0 }
0x10f6   :  { %v880_v60 = vmul.f32 %v879_v59, %v1186_v11 }
0x10f8   :  { %v1091_v61 = vpop.eup %1090  ;;  %1092 = vtanh.f32 %v880_v60 }
0x10f9   :  { %v827_v62 = vmul.f32 %v1091_v61, %v1186_v11 }
0x10fb   :  { %v877_v63 = vpop.f32.mrf.mxu2  ;;  %v828_v1 = vadd.f32 %v827_v62, %v1189_v17 }
0x10fd   :  { %831 = vrot.lane.b32.xlu2 %v828_v1, %s1104_s2  ;;  %v829_v9 = vmul.f32 %v828_v1, %v743_v0 }
0x10fe   :  { %v1093_v2 = vpop.eup %1092 }
0x10ff   :  { %v882_v4 = vmul.f32 %v1093_v2, %v1186_v11 }
0x1101   :  { %v883_v7 = vadd.f32 %v882_v4, %v1189_v17 }
0x1103   :  { %886 = vrot.lane.b32.xlu1 %v883_v7, %s1104_s2  ;;  %v884_v14 = vmul.f32 %v883_v7, %v798_v42 }
0x1157   :  { %v832_v37 = vpop.permute.xlu2 %831 }
0x1158   :  { %v834_v5 = vmul.f32 %v832_v37, %v828_v1 }
0x115a   :  { %836 = vrot.lane.b32.xlu1 %v834_v5, %s1105_s3 }
0x1175   :  { %v887_v6 = vpop.permute.xlu1 %886 }
0x1176   :  { %v889_v8 = vmul.f32 %v887_v6, %v883_v7 }
0x1178   :  { %891 = vrot.lane.b32.xlu0 %v889_v8, %s1105_s3 }
0x11cc   :  { %v837_v10 = vpop.permute.xlu1 %836 }
0x11cd   :  { %v839_v12 = vadd.f32 %v837_v10, %v829_v9 }
0x11cf   :  { %1094 = vtanh.f32 %v839_v12 }
0x11d5   :  { %v1095_v13 = vpop.eup %1094 }
0x11d6   :  { %842 = vrot.lane.b32.xlu0 %v1095_v13, %s1104_s2 }
0x11ea   :  { %v892_v15 = vpop.permute.xlu0 %891 }
0x11eb   :  { %v894_v16 = vadd.f32 %v892_v15, %v884_v14 }
0x11ed   :  { %1096 = vtanh.f32 %v894_v16 }
0x11f3   :  { %v1097_v18 = vpop.eup %1096 }
0x11f4   :  { %897 = vrot.lane.b32.xlu2 %v1097_v18, %s1104_s2 }
0x1248   :  { %v843_v26 = vpop.permute.xlu0 %842 }
0x1249   :  { %v845_v19 = vmul.f32 %v843_v26, %v828_v1 }
0x124b   :  { %v846_v28 = vpack.c.bf16 %v845_v19, %v845_v19 }
0x124d   :  { %848 = vrot.lane.b32.xlu2 %v846_v28, %s1105_s3 }
0x124e   :  { %v898_v20 = vpop.permute.xlu2 %897 }
0x124f   :  { %v900_v21 = vmul.f32 %v898_v20, %v883_v7 }
0x1251   :  { %v901_v22 = vpack.c.bf16 %v900_v21, %v900_v21 }
0x1253   :  { %903 = vrot.lane.b32.xlu1 %v901_v22, %s1105_s3 }
0x12a7   :  { %v849_v23 = vpop.permute.xlu2 %848 }
0x12a8   :  { %1020 = vmatmul.msk.bf16.vlgmr.msra.gmra.mxu1 %vm153_vm5, %v849_v23 }
0x12c5   :  { %v904_v24 = vpop.permute.xlu1 %903 }
0x12c6   :  { %1022 = vmatmul.msk.bf16.vlgmr.msra.gmra.mxu3 %vm153_vm5, %v904_v24 }
0x1325   :  { %v862_v25 = vpop.f32.mrf.mxu1 }
0x1326   :  { %v863_v30 = vadd.f32 %v1247_v38, %v862_v25 }
0x132d   :  { %v864_v29 = vpop.f32.mrf.mxu1 }
0x1349   :  { %v917_v31 = vpop.f32.mrf.mxu3 }
0x134a   :  { %v918_v33 = vadd.f32 %v917_v31, %v863_v30 }
0x134c   :  { %v921_v34 = vmul.f32 %v918_v33, %v1186_v11 }
0x134e   :  { %1098 = vtanh.f32 %v921_v34 }
0x1351   :  { %v919_v35 = vpop.f32.mrf.mxu3 }
0x1354   :  { %v1099_v36 = vpop.eup %1098 }
0x1355   :  { %v923_v39 = vmul.f32 %v1099_v36, %v1186_v11 }
0x1357   :  { %v924_v0 = vadd.f32 %v923_v39, %v1189_v17 }
0x1359   :  { %927 = vrot.lane.b32.xlu0 %v924_v0, %s1104_s2  ;;  %v925_v41 = vmul.f32 %v924_v0, %v839_v12 }
0x1361   :  { %946 = vrot.lane.b32.xlu0 %v1036_v3, %s1106_s18 }
0x13cb   :  { %v928_v38 = vpop.permute.xlu0 %927 }
0x13cc   :  { %v930_v40 = vmul.f32 %v928_v38, %v924_v0 }
0x13ce   :  { %932 = vrot.lane.b32.xlu1 %v930_v40, %s1105_s3 }
0x13d3   :  { %v947_v45 = vpop.permute.xlu0 %946 }
0x1440   :  { %v933_v42 = vpop.permute.xlu1 %932 }
0x1441   :  { %v935_v43 = vadd.f32 %v933_v42, %v925_v41 }
0x1443   :  { %1100 = vtanh.f32 %v935_v43 }
0x1449   :  { %v1101_v44 = vpop.eup %1100 }
0x144a   :  { %938 = vrot.lane.b32.xlu2 %v1101_v44, %s1104_s2 }
0x14a4   :  { %v939_v11 = vpop.permute.xlu2 %938 }
0x14a5   :  { %v941_v17 = vmul.f32 %v939_v11, %v924_v0 }
0x14a7   :  { %v942_v46 = vmax.f32 %v941_v17, 0.0 }
0x14a9   :  { %v949_v47 = vmul.f32 %v947_v45, %v942_v46 }
0x14ab   :  { %951 = vrot.lane.b32.xlu1 %v949_v47, %s1105_s3 }
0x151d   :  { %v952_v49 = vpop.permute.xlu1 %951 }
0x151e   :  { %v954_v50 = vsel %vm153_vm5, %v952_v49, 0.0 }
0x151f   :  { %955 = vadd.xlane.f32.xlu2 %v954_v50 }
0x1592   :  { %v956_v52 = vpop.xlane.xlu2 %955 }
0x1593   :  { %v961_v53 = vadd.f32 %v1037_v51, %v956_v52 }
0x1595   :  { %963 = vst.msk [vmem:[%s1471_s9] sm:$0xff] %vm962_vm6, %v961_v53 }

</bundles_post_ra>
